<compile_context>
chip_gen: v6e
topology: v6e:2x2x1
jax: 0.10.0
libtpu: 0.0.40
codegen_flags: <defaults>
</compile_context>

<pallas_src>
import math
from functools import partial

import jax
import jax.numpy as jnp
import numpy as np
from jax import lax
from jax.experimental import pallas as pl
from jax.experimental.pallas import tpu as pltpu


# ---------------------------------------------------------------------------
# Pallas kernel
# ---------------------------------------------------------------------------
def attention_block_kernel(x_ref, wq_ref, wk_ref, wv_ref, wp_ref, o_ref,
                           q_scr, k_scr, v_scr, *, heads, tq):
    # x_ref : (C, T)       one batch element, T (=H*W) on the lane axis
    # w*_ref: (heads, C, d) pre-transposed weights (softmax scale folded into q and k)
    # wp_ref: (heads, C, d) proj_out weight split per head
    # o_ref : (C, tq)       lane-dense output tile
    # q/k/v_scr: (heads, T, d) VMEM scratch, filled once per batch element
    C, T = x_ref.shape
    d = C // heads
    cdtype = x_ref.dtype
    qi = pl.program_id(1)

    # ---- prologue: project q, k, v for the full sequence once per batch element ----
    @pl.when(qi == 0)
    def _():
        x_tc = x_ref[...].T                                    # (T, C) VMEM transpose (once)
        for h in range(heads):                                 # static unroll
            q_scr[h] = jnp.dot(x_tc, wq_ref[h],
                               preferred_element_type=jnp.float32).astype(cdtype)
            k_scr[h] = jnp.dot(x_tc, wk_ref[h],
                               preferred_element_type=jnp.float32).astype(cdtype)
            v_scr[h] = jnp.dot(x_tc, wv_ref[h],
                               preferred_element_type=jnp.float32).astype(cdtype)

    # ---- attention for this query tile ----
    row0 = pl.multiple_of(qi * tq, tq)
    acc = jnp.zeros((C, tq), jnp.float32)                      # fp32 output accumulator
    for h in range(heads):                                     # static unroll
        q = q_scr[h, pl.ds(row0, tq), :]                       # (tq, d)  scale pre-folded
        k = k_scr[h]                                           # (T, d)   scale pre-folded
        v = v_scr[h]                                           # (T, d)

        # q @ k^T without materializing a transpose (MXU-native rhs-transposed form)
        logits = lax.dot_general(q, k, (((1,), (1,)), ((), ())),
                                 preferred_element_type=jnp.float32)      # (tq, T)

        # softmax: max/exp/sum in fp32, normalization fused into the PV output
        m = jnp.max(logits, axis=-1, keepdims=True)
        p = jnp.exp(logits - m)
        s = jnp.sum(p, axis=-1, keepdims=True)
        o_h = jnp.dot(p.astype(cdtype), v,
                      preferred_element_type=jnp.float32)                 # (tq, d)
        o_h = (o_h * (1.0 / s)).astype(cdtype)

        # per-head output projection accumulated into (C, tq): no head concat
        acc = acc + lax.dot_general(wp_ref[h], o_h, (((1,), (1,)), ((), ())),
                                    preferred_element_type=jnp.float32)   # (C, tq)

    o_ref[...] = acc.astype(o_ref.dtype)


def _choose_query_tile(T: int) -> int:
    """Query-tile length dividing T; bounds the (tq, T) logits tile (v7x: 64 MiB VMEM)."""
    if T <= 1024:
        return T
    for cand in (1024, 512, 256, 128):
        if T % cand == 0:
            return cand
    return T


# ---------------------------------------------------------------------------
# Wrapper: NCHW in / NCHW out
# ---------------------------------------------------------------------------
def attention_block(x_nchw, w_qkv, w_proj, *, heads=1, tq=None):
    B, C, H, W = x_nchw.shape
    T = H * W
    assert C % heads == 0, "channels must be divisible by heads"
    d = C // heads
    scale = 1.0 / math.sqrt(math.sqrt(d))     # OpenAI QKVAttention scaling: (q*s)·(k*s)
    dtype = x_nchw.dtype

    # NCHW -> (B, C, T): pure reshape, no HBM transpose pass (and none on the way out).
    x_bct = x_nchw.reshape(B, C, T)

    # Pre-transpose / pre-split per head / pre-scale weights once, outside the kernel.
    wq_t = jnp.transpose(w_qkv[0 * C:1 * C].reshape(heads, d, C), (0, 2, 1)) * scale
    wk_t = jnp.transpose(w_qkv[1 * C:2 * C].reshape(heads, d, C), (0, 2, 1)) * scale
    wv_t = jnp.transpose(w_qkv[2 * C:3 * C].reshape(heads, d, C), (0, 2, 1))
    wp = jnp.transpose(w_proj.reshape(C, heads, d), (1, 0, 2))            # (heads, C, d)
    wq_t = wq_t.astype(dtype)
    wk_t = wk_t.astype(dtype)
    wv_t = wv_t.astype(dtype)
    wp = wp.astype(dtype)

    if tq is None:
        tq = _choose_query_tile(T)
    assert T % tq == 0
    nq = T // tq

    itemsize = jnp.dtype(dtype).itemsize
    cost = pl.CostEstimate(
        flops=int(B * (8 * T * C * C + 4 * T * T * C)),
        transcendentals=int(B * heads * T * T),
        bytes_accessed=int(itemsize * (2 * B * C * T + 4 * C * C)),
    )

    kernel = partial(attention_block_kernel, heads=heads, tq=tq)
    out_bct = pl.pallas_call(
        kernel,
        out_shape=jax.ShapeDtypeStruct((B, C, T), dtype),
        grid_spec=pltpu.PrefetchScalarGridSpec(
            num_scalar_prefetch=0,
            grid=(B, nq),
            in_specs=[
                # leading batch dim squeezed out of the kernel refs (None block dim)
                pl.BlockSpec((None, C, T), lambda b, q: (b, 0, 0)),     # x, one batch elem
                pl.BlockSpec((heads, C, d), lambda b, q: (0, 0, 0)),    # Wq^T (scale folded)
                pl.BlockSpec((heads, C, d), lambda b, q: (0, 0, 0)),    # Wk^T (scale folded)
                pl.BlockSpec((heads, C, d), lambda b, q: (0, 0, 0)),    # Wv^T
                pl.BlockSpec((heads, C, d), lambda b, q: (0, 0, 0)),    # Wproj split per head
            ],
            out_specs=pl.BlockSpec((None, C, tq), lambda b, q: (b, 0, q)),
            scratch_shapes=[
                pltpu.VMEM((heads, T, d), dtype),   # q
                pltpu.VMEM((heads, T, d), dtype),   # k
                pltpu.VMEM((heads, T, d), dtype),   # v
            ],
        ),
        compiler_params=pltpu.CompilerParams(
            # batch axis parallel (megacore on v7x); query-tile axis stays sequential
            # ("arbitrary") because the q/k/v scratch is filled at query tile 0.
            dimension_semantics=("parallel", "arbitrary"),
            vmem_limit_bytes=64 * 1024 * 1024,
        ),
        cost_estimate=cost,
    )(x_bct, wq_t, wk_t, wv_t, wp)

    # (B, C, T) -> NCHW: pure reshape, no transpose
    return out_bct.reshape(B, C, H, W)


# ---------------------------------------------------------------------------
# Pure-JAX reference (mirrors the PyTorch forward semantics exactly)
# ---------------------------------------------------------------------------
def attention_block_ref(x_nchw, w_qkv, w_proj, *, heads=1):
    B, C, H, W = x_nchw.shape
    T = H * W
    d = C // heads
    scale = 1.0 / math.sqrt(math.sqrt(d))

    x = x_nchw.reshape(B, C, T)                          # (B, C, T)
    qkv = jnp.einsum("oc,bct->bot", w_qkv, x)            # (B, 3C, T) 1x1 conv, no bias
    q, k, v = jnp.split(qkv, 3, axis=1)
    q = q.reshape(B * heads, d, T)
    k = k.reshape(B * heads, d, T)
    v = v.reshape(B * heads, d, T)
    weight = jnp.einsum("bct,bcs->bts", q * scale, k * scale)
    weight = jax.nn.softmax(weight.astype(jnp.float32), axis=-1).astype(weight.dtype)
    a = jnp.einsum("bts,bcs->bct", weight, v).reshape(B, C, T)
    h = jnp.einsum("oc,bct->bot", w_proj, a)             # proj_out 1x1 conv, no bias
    return h.reshape(B, C, H, W)


if __name__ == "__main__":
    # Small shapes consistent with the module: batch=2, channels=4, spatial=16, heads=1
    B, C, H, W = 2, 4, 16, 16
    heads = 1

    key = jax.random.PRNGKey(0)
    kx, kq, kp = jax.random.split(key, 3)

    x = jax.random.normal(kx, (B, C, H, W), dtype=jnp.float32)

    # Deterministic init mimicking nn.Conv2d default (kaiming_uniform, a=sqrt(5)):
    # uniform(-1/sqrt(fan_in), 1/sqrt(fan_in)), fan_in = C*1*1; Conv1x1 has bias=False.
    bound = 1.0 / math.sqrt(C)
    w_qkv = jax.random.uniform(kq, (3 * C, C), jnp.float32, -bound, bound)   # qkv.weight[:, :, 0, 0]
    w_proj = jax.random.uniform(kp, (C, C), jnp.float32, -bound, bound)      # proj_out.weight[:, :, 0, 0]

    out = attention_block(x, w_qkv, w_proj, heads=heads)
    out = jax.block_until_ready(out)

    ref = jax.block_until_ready(attention_block_ref(x, w_qkv, w_proj, heads=heads))
    np.testing.assert_allclose(np.asarray(out), np.asarray(ref), rtol=1e-4, atol=1e-5)

    print("KERNEL_OK")
</pallas_src>

<mosaic_0001>
module attributes {stable_mosaic.version = 11 : i64} {
  func.func @attention_block_kernel(%arg0: i32, %arg1: i32, %arg2: memref<1x4x256xf32, #tpu.memory_space<vmem>>, %arg3: memref<1x4x4xf32, #tpu.memory_space<vmem>>, %arg4: memref<1x4x4xf32, #tpu.memory_space<vmem>>, %arg5: memref<1x4x4xf32, #tpu.memory_space<vmem>>, %arg6: memref<1x4x4xf32, #tpu.memory_space<vmem>>, %arg7: memref<1x4x256xf32, #tpu.memory_space<vmem>>, %arg8: memref<1x256x4xf32, #tpu.memory_space<vmem>>, %arg9: memref<1x256x4xf32, #tpu.memory_space<vmem>>, %arg10: memref<1x256x4xf32, #tpu.memory_space<vmem>>) attributes {dimension_semantics = [#tpu.dimension_semantics<parallel>, #tpu.dimension_semantics<arbitrary>], iteration_bounds = array<i64: 2, 1>, scalar_prefetch = 0 : i64, scratch_operands = 3 : i64, tpu.core_type = #tpu.core_type<tc>, window_params = [{transform_indices = @transform_0, window_bounds = array<i64: 1, 4, 256>}, {pipeline_mode = #tpu.pipeline_mode<synchronous>, transform_indices = @transform_1, window_bounds = array<i64: 1, 4, 4>}, {pipeline_mode = #tpu.pipeline_mode<synchronous>, transform_indices = @transform_2, window_bounds = array<i64: 1, 4, 4>}, {pipeline_mode = #tpu.pipeline_mode<synchronous>, transform_indices = @transform_3, window_bounds = array<i64: 1, 4, 4>}, {pipeline_mode = #tpu.pipeline_mode<synchronous>, transform_indices = @transform_4, window_bounds = array<i64: 1, 4, 4>}, {transform_indices = @transform_5, window_bounds = array<i64: 1, 4, 256>}]} {
    %c0_i32 = arith.constant 0 : i32
    %0 = arith.cmpi eq, %arg1, %c0_i32 : i32
    %1 = arith.extui %0 : i1 to i32
    %c0_i32_0 = arith.constant 0 : i32
    %2 = arith.cmpi ne, %1, %c0_i32_0 : i32
    scf.if %2 {
      %c0_20 = arith.constant 0 : index
      %c0_21 = arith.constant 0 : index
      %c0_22 = arith.constant 0 : index
      %33 = vector.load %arg2[%c0_20, %c0_21, %c0_22] : memref<1x4x256xf32, #tpu.memory_space<vmem>>, vector<1x4x256xf32>
      %34 = vector.shape_cast %33 : vector<1x4x256xf32> to vector<4x256xf32>
      %35 = tpu.transpose %34, [1, 0] : vector<4x256xf32> -> vector<256x4xf32>
      %c0_23 = arith.constant 0 : index
      %c0_24 = arith.constant 0 : index
      %c0_25 = arith.constant 0 : index
      %36 = vector.load %arg3[%c0_23, %c0_24, %c0_25] : memref<1x4x4xf32, #tpu.memory_space<vmem>>, vector<1x4x4xf32>
      %37 = vector.shape_cast %36 : vector<1x4x4xf32> to vector<4x4xf32>
      %cst_26 = arith.constant dense<0.000000e+00> : vector<256x4xf32>
      %38 = tpu.matmul %35, %37, %cst_26 {dimension_numbers = #tpu.dot_dimension_numbers<[1], [0], [0], [1], [0, 0, 1, 1], [], []>} : vector<256x4xf32>, vector<4x4xf32>, vector<256x4xf32> -> vector<256x4xf32>
      %c0_27 = arith.constant 0 : index
      %c0_28 = arith.constant 0 : index
      %c0_29 = arith.constant 0 : index
      %39 = vector.load %arg8[%c0_27, %c0_28, %c0_29] : memref<1x256x4xf32, #tpu.memory_space<vmem>>, vector<1x256x4xf32>
      %40 = vector.shape_cast %39 : vector<1x256x4xf32> to vector<256x4xf32>
      %41 = vector.shape_cast %38 : vector<256x4xf32> to vector<1x256x4xf32>
      tpu.vector_store %arg8[%c0_27, %c0_28, %c0_29], %41 {strides = array<i32>} : memref<1x256x4xf32, #tpu.memory_space<vmem>>, vector<1x256x4xf32>,
      %c0_30 = arith.constant 0 : index
      %c0_31 = arith.constant 0 : index
      %c0_32 = arith.constant 0 : index
      %42 = vector.load %arg4[%c0_30, %c0_31, %c0_32] : memref<1x4x4xf32, #tpu.memory_space<vmem>>, vector<1x4x4xf32>
      %43 = vector.shape_cast %42 : vector<1x4x4xf32> to vector<4x4xf32>
      %cst_33 = arith.constant dense<0.000000e+00> : vector<256x4xf32>
      %44 = tpu.matmul %35, %43, %cst_33 {dimension_numbers = #tpu.dot_dimension_numbers<[1], [0], [0], [1], [0, 0, 1, 1], [], []>} : vector<256x4xf32>, vector<4x4xf32>, vector<256x4xf32> -> vector<256x4xf32>
      %c0_34 = arith.constant 0 : index
      %c0_35 = arith.constant 0 : index
      %c0_36 = arith.constant 0 : index
      %45 = vector.load %arg9[%c0_34, %c0_35, %c0_36] : memref<1x256x4xf32, #tpu.memory_space<vmem>>, vector<1x256x4xf32>
      %46 = vector.shape_cast %45 : vector<1x256x4xf32> to vector<256x4xf32>
      %47 = vector.shape_cast %44 : vector<256x4xf32> to vector<1x256x4xf32>
      tpu.vector_store %arg9[%c0_34, %c0_35, %c0_36], %47 {strides = array<i32>} : memref<1x256x4xf32, #tpu.memory_space<vmem>>, vector<1x256x4xf32>,
      %c0_37 = arith.constant 0 : index
      %c0_38 = arith.constant 0 : index
      %c0_39 = arith.constant 0 : index
      %48 = vector.load %arg5[%c0_37, %c0_38, %c0_39] : memref<1x4x4xf32, #tpu.memory_space<vmem>>, vector<1x4x4xf32>
      %49 = vector.shape_cast %48 : vector<1x4x4xf32> to vector<4x4xf32>
      %cst_40 = arith.constant dense<0.000000e+00> : vector<256x4xf32>
      %50 = tpu.matmul %35, %49, %cst_40 {dimension_numbers = #tpu.dot_dimension_numbers<[1], [0], [0], [1], [0, 0, 1, 1], [], []>} : vector<256x4xf32>, vector<4x4xf32>, vector<256x4xf32> -> vector<256x4xf32>
      %c0_41 = arith.constant 0 : index
      %c0_42 = arith.constant 0 : index
      %c0_43 = arith.constant 0 : index
      %51 = vector.load %arg10[%c0_41, %c0_42, %c0_43] : memref<1x256x4xf32, #tpu.memory_space<vmem>>, vector<1x256x4xf32>
      %52 = vector.shape_cast %51 : vector<1x256x4xf32> to vector<256x4xf32>
      %53 = vector.shape_cast %50 : vector<256x4xf32> to vector<1x256x4xf32>
      tpu.vector_store %arg10[%c0_41, %c0_42, %c0_43], %53 {strides = array<i32>} : memref<1x256x4xf32, #tpu.memory_space<vmem>>, vector<1x256x4xf32>,
    } else {
    }
    %c256_i32 = arith.constant 256 : i32
    %3 = arith.muli %arg1, %c256_i32 : i32
    %4 = tpu.assume_multiple %3, 256 : i32
    %cst = arith.constant 0.000000e+00 : f32
    %5 = vector.broadcast %cst : f32 to vector<4x256xf32>
    %c0 = arith.constant 0 : index
    %6 = arith.index_cast %4 : i32 to index
    %c0_1 = arith.constant 0 : index
    %7 = vector.load %arg8[%c0, %6, %c0_1] : memref<1x256x4xf32, #tpu.memory_space<vmem>>, vector<1x256x4xf32>
    %8 = vector.shape_cast %7 : vector<1x256x4xf32> to vector<256x4xf32>
    %c0_2 = arith.constant 0 : index
    %c0_3 = arith.constant 0 : index
    %c0_4 = arith.constant 0 : index
    %9 = vector.load %arg9[%c0_2, %c0_3, %c0_4] : memref<1x256x4xf32, #tpu.memory_space<vmem>>, vector<1x256x4xf32>
    %10 = vector.shape_cast %9 : vector<1x256x4xf32> to vector<256x4xf32>
    %c0_5 = arith.constant 0 : index
    %c0_6 = arith.constant 0 : index
    %c0_7 = arith.constant 0 : index
    %11 = vector.load %arg10[%c0_5, %c0_6, %c0_7] : memref<1x256x4xf32, #tpu.memory_space<vmem>>, vector<1x256x4xf32>
    %12 = vector.shape_cast %11 : vector<1x256x4xf32> to vector<256x4xf32>
    %cst_8 = arith.constant dense<0.000000e+00> : vector<256x256xf32>
    %13 = tpu.matmul %8, %10, %cst_8 {dimension_numbers = #tpu.dot_dimension_numbers<[1], [1], [0], [0], [0, 0, 1, 0], [], []>} : vector<256x4xf32>, vector<256x4xf32>, vector<256x256xf32> -> vector<256x256xf32>
    %cst_9 = arith.constant dense<0xFF800000> : vector<256xf32>
    %14 = vector.multi_reduction <maximumf>, %13, %cst_9 [1] : vector<256x256xf32> to vector<256xf32>
    %15 = vector.shape_cast %14 : vector<256xf32> to vector<256x1xf32>
    %16 = vector.broadcast %15 : vector<256x1xf32> to vector<256x256xf32>
    %17 = arith.subf %13, %16 : vector<256x256xf32>
    %18 = math.exp %17 : vector<256x256xf32>
    %cst_10 = arith.constant dense<0.000000e+00> : vector<256xf32>
    %19 = vector.multi_reduction <add>, %18, %cst_10 [1] : vector<256x256xf32> to vector<256xf32>
    %20 = vector.shape_cast %19 : vector<256xf32> to vector<256x1xf32>
    %cst_11 = arith.constant dense<0.000000e+00> : vector<256x4xf32>
    %21 = tpu.matmul %18, %12, %cst_11 {dimension_numbers = #tpu.dot_dimension_numbers<[1], [0], [0], [1], [0, 0, 1, 1], [], []>} : vector<256x256xf32>, vector<256x4xf32>, vector<256x4xf32> -> vector<256x4xf32>
    %cst_12 = arith.constant 1.000000e+00 : f32
    %22 = vector.broadcast %cst_12 : f32 to vector<256x1xf32>
    %23 = arith.divf %22, %20 : vector<256x1xf32>
    %24 = vector.broadcast %23 : vector<256x1xf32> to vector<256x4xf32>
    %25 = arith.mulf %21, %24 : vector<256x4xf32>
    %c0_13 = arith.constant 0 : index
    %c0_14 = arith.constant 0 : index
    %c0_15 = arith.constant 0 : index
    %26 = vector.load %arg6[%c0_13, %c0_14, %c0_15] : memref<1x4x4xf32, #tpu.memory_space<vmem>>, vector<1x4x4xf32>
    %27 = vector.shape_cast %26 : vector<1x4x4xf32> to vector<4x4xf32>
    %cst_16 = arith.constant dense<0.000000e+00> : vector<4x256xf32>
    %28 = tpu.matmul %27, %25, %cst_16 {dimension_numbers = #tpu.dot_dimension_numbers<[1], [1], [0], [0], [0, 0, 1, 0], [], []>} : vector<4x4xf32>, vector<256x4xf32>, vector<4x256xf32> -> vector<4x256xf32>
    %29 = arith.addf %5, %28 : vector<4x256xf32>
    %c0_17 = arith.constant 0 : index
    %c0_18 = arith.constant 0 : index
    %c0_19 = arith.constant 0 : index
    %30 = vector.load %arg7[%c0_17, %c0_18, %c0_19] : memref<1x4x256xf32, #tpu.memory_space<vmem>>, vector<1x4x256xf32>
    %31 = vector.shape_cast %30 : vector<1x4x256xf32> to vector<4x256xf32>
    %32 = vector.shape_cast %29 : vector<4x256xf32> to vector<1x4x256xf32>
    tpu.vector_store %arg7[%c0_17, %c0_18, %c0_19], %32 {strides = array<i32>} : memref<1x4x256xf32, #tpu.memory_space<vmem>>, vector<1x4x256xf32>,
    return
  }
  func.func @transform_0(%arg0: i32, %arg1: i32) -> (i32, i32, i32) {
    %c0_i32 = arith.constant 0 : i32
    %c0_i32_0 = arith.constant 0 : i32
    %c0_i32_1 = arith.constant 0 : i32
    return %arg0, %c0_i32, %c0_i32_0 : i32, i32, i32
  }
  func.func @transform_1(%arg0: i32, %arg1: i32) -> (i32, i32, i32) {
    %c0_i32 = arith.constant 0 : i32
    %c0_i32_0 = arith.constant 0 : i32
    %c0_i32_1 = arith.constant 0 : i32
    %c0_i32_2 = arith.constant 0 : i32
    return %c0_i32, %c0_i32_0, %c0_i32_1 : i32, i32, i32
  }
  func.func @transform_2(%arg0: i32, %arg1: i32) -> (i32, i32, i32) {
    %c0_i32 = arith.constant 0 : i32
    %c0_i32_0 = arith.constant 0 : i32
    %c0_i32_1 = arith.constant 0 : i32
    %c0_i32_2 = arith.constant 0 : i32
    return %c0_i32, %c0_i32_0, %c0_i32_1 : i32, i32, i32
  }
  func.func @transform_3(%arg0: i32, %arg1: i32) -> (i32, i32, i32) {
    %c0_i32 = arith.constant 0 : i32
    %c0_i32_0 = arith.constant 0 : i32
    %c0_i32_1 = arith.constant 0 : i32
    %c0_i32_2 = arith.constant 0 : i32
    return %c0_i32, %c0_i32_0, %c0_i32_1 : i32, i32, i32
  }
  func.func @transform_4(%arg0: i32, %arg1: i32) -> (i32, i32, i32) {
    %c0_i32 = arith.constant 0 : i32
    %c0_i32_0 = arith.constant 0 : i32
    %c0_i32_1 = arith.constant 0 : i32
    %c0_i32_2 = arith.constant 0 : i32
    return %c0_i32, %c0_i32_0, %c0_i32_1 : i32, i32, i32
  }
  func.func @transform_5(%arg0: i32, %arg1: i32) -> (i32, i32, i32) {
    %c0_i32 = arith.constant 0 : i32
    %c0_i32_0 = arith.constant 0 : i32
    return %arg0, %c0_i32, %arg1 : i32, i32, i32
  }
}

</mosaic_0001>

<bundles_post_ra>
// kernel: tpu_custom_call.1
= control target key start
LH: loop header
LB: loop body
LE: loop exit
PB: predicated region body
PF: predicated region fallthrough
CT: control target
= control target key end

     0   :  { %s4995_s0 = inlined_call_operand.hbm [shape: f32[2,4,256], index: 0, kind: input, shape index: {}]   ;;  %s4996_s1 = inlined_call_operand.hbm [shape: f32[1,4,4], index: 1, kind: input, shape index: {}]   ;;  %s4997_s2 = inlined_call_operand.hbm [shape: f32[1,4,4], index: 2, kind: input, shape index: {}]   ;;  %s4998_s3 = inlined_call_operand.vmem [shape: f32[1,4,4], index: 3, kind: input, shape index: {}]   ;;  %s4999_s4 = inlined_call_operand.hbm [shape: f32[1,4,4], index: 4, kind: input, shape index: {}]   ;;  %s5000_s5 = inlined_call_operand.hbm [shape: f32[2,4,256], index: 5, kind: output, shape index: {}]  }
   0x1   :  { %5018 = sst [smem:[#allocation31_spill]] %s4996_s1 }
   0x2   :  { %10 = vsyncpa [#allocation6], 0 }
   0x3   :  { %12 = vsyncpa [#allocation6 + $0x1], 0 }
   0x4   :  { %13 = vsyncpa [#allocation9], 0 }
   0x5   :  { %14 = vsyncpa [#allocation12], 0 }
   0x6   :  { %15 = vsyncpa [#allocation7], 0 }
   0x7   :  { %17 = vsyncpa [#allocation7 + $0x1], 0  ;;  %s3924_s18 = smov 0   ;;  %s3926_s19 = smov 0  }
   0x8   :  { %s3928_s20 = smov 0   ;;  %s3930_s21 = smov 0  }
   0x9   :  { %s3932_s22 = smov 0   ;;  %s3934_s23 = smov 0  }
   0xa LB: > { %s2805_s24 = sadd.s32 4294967295, %s3886_s23   ;;  %s2806_s25 = sadd.s32 4294967294, %s3886_s23   ;;  %s3886_s23 = sphi %s3934_s23, %s23_s23   ;;  %s3882_s22 = sphi %s3932_s22, %s5064_s22   ;;  %s3878_s21 = sphi %s3930_s21, %s5063_s21   ;;  %s3874_s20 = sphi %s3928_s20, %s5062_s20   ;;  %s3870_s19 = sphi %s3926_s19, %s5061_s19   ;;  %s3866_s18 = sphi %s3924_s18, %s5060_s18  }
   0xb   : > { %p55_p0 = scmp.ne.s32.totalorder %s3870_s19, %s3866_s18  ;;  %p3958_p1 = scmp.eq.s32.totalorder %s2805_s24, 0 }
   0xc   : > { %p3962_p2 = scmp.eq.s32.totalorder %s2805_s24, 1  ;;  %p171_p3 = scmp.eq.s32.totalorder %s2806_s25, 1 }
   0xd   : > { %s5019_s26 = scalar_select %p3958_p1, 1, 0 }
   0xe   : > { %s5020_s27 = scalar_select %p3962_p2, 1, 0 }
   0xf   : > { %p3968_p4 = por %p3958_p1, %p55_p0  ;;  %p2807_p5 = scmp.ge.s32.totalorder %s3886_s23, 1 }
  0x10   : > { %p3973_p6 = por %p171_p3, %p55_p0  ;;  %p178_p7 = scmp.lt.s32.totalorder %s3886_s23, 3 }
  0x11   : > { %s5021_s28 = scalar_select %p3968_p4, 1, 0 }
  0x12   : > { %s5022_s29 = scalar_select %p3973_p6, 1, 0 }
  0x13   : > { %p3978_p8 = pnand %p2807_p5, %p178_p7  ;;  %s3888_s6 = smov [#allocation8]  }
  0x14   : > { %s191_s7 = sshll.u32 %s3888_s6, 4  ;;  %s3889_s8 = smov [#allocation10]   ;;  %s192_s7 = int_to_ptr.vmem [resolvable:$true] %s191_s7 }
  0x15   : > { %s5023_s30 = scalar_select %p3978_p8, 1, 0 }
  0x16   : > { %p3421_p10 = pneg %p3978_p8  ;;  %s202_s9 = sshll.u32 %s3889_s8, 4  ;;  %s203_s9 = int_to_ptr.vmem [resolvable:$true] %s202_s9 }
  0x17   : > { %s3890_s11 = smov [#allocation11]   ;;  %s3703_s13 = scalar_lea.vmem %s192_s7, 64 }
  0x18   : > { %p3987_p11 = pnand %p3421_p10, %p3958_p1  ;;  %s216_s12 = sshll.u32 %s3890_s11, 4  ;;  %s3991_s12 = int_to_ptr.vmem [resolvable:$true] %s216_s12 }
  0x19   : > { %p3704_p13 = scmp.ne.s32.totalorder %s192_s7, %s3703_s13  ;;  %p3711_p5 = scmp.lt.s32.totalorder %s192_s7, %s192_s7 }
  0x1a   : > { %p3694_p12 = pneg %p3987_p11  ;;  %p3712_p7 = scmp.lt.s32.totalorder %s3703_s13, %s3703_s13 }
  0x1c   : > { %p3706_p0 = pnand %p3704_p13, %p3694_p12  ;;  %p3713_p10 = por %p3712_p7, %p3711_p5 }
  0x1e   : > { %p3707_p3 = pneg %p3706_p0 }
  0x20   : > { %p3714_p9 = pnand %p3713_p10, %p3707_p3 }
  0x22   : > { %3717 = shalt.err (!%p3714_p9)
}
  0x23   : > { %s5025_s1 = sld [smem:[#allocation31_spill]]  ;;  %s3729_s16 = scalar_lea.vmem %s203_s9, 64 }
  0x24   : > { %p3730_p6 = scmp.ne.s32.totalorder %s203_s9, %s3729_s16  ;;  %p3737_p13 = scmp.lt.s32.totalorder %s203_s9, %s203_s9 }
  0x25   : > { %p3738_p0 = scmp.lt.s32.totalorder %s3729_s16, %s3729_s16 }
  0x26   : > { %p3732_p1 = pnand %p3730_p6, %p3694_p12 }
  0x27   : > { %p3739_p8 = por %p3738_p0, %p3737_p13 }
  0x28   : > { %p3733_p4 = pneg %p3732_p1 }
  0x29   : > { %3424 = dma.hbm_to_vmem [thread:$0]  (!%p3987_p11), %s5025_s1, 64, %s192_s7, [#allocation9]  }
  0x2a   : > { %p3740_p2 = pnand %p3739_p8, %p3733_p4 }
  0x2c   : > { %3743 = shalt.err (!%p3740_p2)
}
  0x2d   : > { %3427 = dma.hbm_to_vmem [thread:$0]  (!%p3987_p11), %s4997_s2, 64, %s203_s9, [#allocation9]  }
  0x2e   : > { %s3755_s25 = scalar_lea.vmem %s3991_s12, 64  ;;  %p3763_p3 = scmp.lt.s32.totalorder %s3991_s12, %s3991_s12 }
  0x2f   : > { %p3756_p9 = scmp.ne.s32.totalorder %s3991_s12, %s3755_s25  ;;  %p3764_p4 = scmp.lt.s32.totalorder %s3755_s25, %s3755_s25 }
  0x31   : > { %p3758_p1 = pnand %p3756_p9, %p3694_p12  ;;  %p3765_p2 = por %p3764_p4, %p3763_p3 }
  0x33   : > { %p3759_p6 = pneg %p3758_p1 }
  0x35   : > { %p3766_p8 = pnand %p3765_p2, %p3759_p6 }
  0x37   : > { %3769 = shalt.err (!%p3766_p8)
}
  0x38   : > { %3430 = dma.hbm_to_vmem [thread:$0]  (!%p3987_p11), %s4999_s4, 64, %s3991_s12, [#allocation12]  }
  0x39   : > { %s42_s8 = sadd.s32 1, %s3874_s20  ;;  %s35_s9 = sadd.s32 1, %s3882_s22 }
  0x3a   : > { %p49_p12 = scmp.ne.s32.totalorder %s3874_s20, %s3870_s19  ;;  %p37_p5 = scmp.ge.s32.totalorder %s35_s9, 2 }
  0x3b   : > { %p50_p7 = scmp.eq.s32.totalorder %s3886_s23, 0  ;;  %p5026_p10 = scmp.ne.s32.totalorder %s5020_s27, 0 }
  0x3c   : > { %p3442_p0 = scmp.lt.s32.totalorder %s3886_s23, 2  ;;  %s5066_s9 = smov (%p37_p5, %s35_s9), 0 }
  0x3d   : > { %p4031_p13 = por %p5026_p10, %p49_p12  ;;  %p51_p9 = por %p50_p7, %p49_p12 }
  0x3e   : > { %s227_s11 = sand.u32 1, %s3874_s20   ;;  %s39_s13 = ssub.s32 %s3882_s22, %s5066_s9 }
  0x3f   : > { %p40_p1 = scmp.eq.s32.totalorder %s39_s13, 0  ;;  %s2812_s12 = sshll.u32 %s227_s11, 3 }
  0x40   : > { %s3022_s14 = sshll.u32 %s3882_s22, 7  ;;  %s231_s24 = scalar_lea.vmem [#allocation5], %s2812_s12 }
  0x41   : > { %s4043_s15 = scalar_select %p40_p1, %s3874_s20, %s42_s8  }
  0x42   : > { %s237_s27 = scalar_lea.hbm %s4995_s0, %s3022_s14  ;;  %s239_s25 = sshll.u32 %s231_s24, 4  ;;  %s240_s25 = int_to_ptr.vmem [resolvable:$true] %s239_s25 }
  0x43   : > { %p4050_p11 = pnand %p3442_p0, %p51_p9  ;;  %s228_s7 = scalar_lea.sflag [#allocation6], %s227_s11 }
  0x44   : > { %s3783_s13 = scalar_lea.vmem %s240_s25, 128  ;;  %s3891_s8 = smov [#allocation5]  }
  0x45   : > { %p3772_p6 = pneg %p4050_p11  ;;  %p3784_p3 = scmp.ne.s32.totalorder %s240_s25, %s3783_s13 }
  0x46   : > { %s3788_s1 = sshll.u32 %s3891_s8, 4  ;;  %s3789_s1 = int_to_ptr.vmem [resolvable:$false] %s3788_s1 }
  0x47   : > { %p3786_p4 = pnand %p3784_p3, %p3772_p6  ;;  %s3790_s14 = scalar_lea.vmem %s3789_s1, 256 }
  0x48   : > { %p3791_p8 = scmp.lt.s32.totalorder %s240_s25, %s3789_s1  ;;  %p3792_p12 = scmp.lt.s32.totalorder %s3790_s14, %s3783_s13 }
  0x49   : > { %p3787_p2 = pneg %p3786_p4 }
  0x4a   : > { %p3793_p5 = por %p3792_p12, %p3791_p8 }
  0x4c   : > { %p3794_p7 = pnand %p3793_p5, %p3787_p2 }
  0x4e   : > { %3797 = shalt.err (!%p3794_p7)
}
  0x4f   : > { %3434 = dma.hbm_to_vmem [thread:$0]  (!%p4050_p11), %s237_s27, 128, %s240_s25, %s228_s7  }
  0x50   : > { %p5029_p10 = scmp.ne.s32.totalorder %s5023_s30, 0 }
  0x52   : > { %248 = sbr.rel (%p5029_p10) target bundleno = 1593 (0x639), region = 40 }
  0x57   : > { %s4061_s11 = sand.u32 1, %s3870_s19   ;;  %p5030_p0 = scmp.ne.s32.totalorder %s5021_s28, 0 }
  0x58   : > { %s2816_s12 = sshll.u32 %s4061_s11, 3  ;;  %s251_s16 = scalar_lea.sflag [#allocation6], %s4061_s11 }
  0x59   : > { %s254_s1 = scalar_lea.vmem [#allocation5], %s2816_s12 }
  0x5a   : > { %3849 = dma.done.wait (%p5030_p0), %s251_s16, 128  }
  0x5b   : > { %3851 = vsyncadd (%p5030_p0), %s251_s16, 4294967168  ;;  %p5031_p9 = scmp.ne.s32.totalorder %s5019_s26, 0 }
  0x5d   : > { %3853 = dma.done.wait (%p5031_p9), [#allocation9], 128  }
  0x5e   : > { %3855 = vsyncadd (%p5031_p9), [#allocation9], 4294967168 }
  0x5f   : > { %3857 = dma.done.wait (%p5031_p9), [#allocation12], 64  }
  0x60   : > { %3859 = vsyncadd (%p5031_p9), [#allocation12], 4294967232  ;;  %v298_v0 = vld [vmem:[%s254_s1] sm:$0xff]  ;;  %v366_v2 = vld [vmem:[#allocation8] sm:$0xf]  ;;  %vm464_vm0 = vcmask 1043456  }
  0x61   : > { %v300_v1 = vcombine.high %v298_v0, %v298_v0  ;;  %3403 = vmatprep.subr.msk.mxu1 %vm464_vm0, %v366_v2  ;;  %3253 = vmatprep.subr.msk.mxu0 %vm464_vm0, %v366_v2  ;;  %v725_v3 = vld [vmem:[#allocation10] sm:$0xf]  ;;  %v986_v5 = vld [vmem:[%s4998_s3] sm:$0xf]  ;;  %vm367_vm1 = vcmask 31744   ;;  %v3892_v45 = vmov 0.0  }
  0x62   : > { %3404 = vmatpush3.msk.msra.mxu1 %vm464_vm0, %v366_v2  ;;  %3254 = vmatpush3.msk.msra.mxu0 %vm464_vm0, %v366_v2  ;;  %s3023_s30 = sshll.u32 %s3878_s21, 7  ;;  %s292_s17 = scalar_lea.vmem [#allocation13], %s2816_s12 }
  0x63   : > { %334 = vxpose.xlu0.b32.start.end [1/1] (short) %v300_v1, 128  ;;  %3303 = vmatprep.subr.msk.mxu1 %vm464_vm0, %v725_v3  ;;  %s2693_s27 = sshll.u32 %s292_s17, 4  ;;  %s2691_s6 = scalar_lea.hbm %s5000_s5, %s3023_s30  ;;  %s2694_s27 = int_to_ptr.vmem [resolvable:$true] %s2693_s27 }
  0x64   : > { %3353 = vmatprep.subr.msk.mxu0 %vm464_vm0, %v986_v5  ;;  %s2677_s7 = scalar_lea.sflag [#allocation7], %s4061_s11  ;;  %s3798_s13 = scalar_lea.vmem %s2694_s27, 128 }
  0x65   : > { %p3799_p1 = scmp.ne.s32.totalorder %s2694_s27, %s3798_s13  ;;  %s3893_s8 = smov [#allocation13]  }
  0x66   : > { %s3802_s14 = sshll.u32 %s3893_s8, 4  ;;  %s3803_s14 = int_to_ptr.vmem [resolvable:$false] %s3802_s14 }
  0x67   : > { %p3800_p11 = pnand %p3799_p1, %p4031_p13  ;;  %s3804_s21 = scalar_lea.vmem %s3803_s14, 256 }
  0x68   : > { %p3805_p3 = scmp.lt.s32.totalorder %s2694_s27, %s3803_s14  ;;  %p3806_p4 = scmp.lt.s32.totalorder %s3804_s21, %s3798_s13 }
  0x69   : > { %p3801_p6 = pneg %p3800_p11 }
  0x6a   : > { %p3807_p2 = por %p3806_p4, %p3805_p3 }
  0x6c   : > { %p3808_p8 = pnand %p3807_p2, %p3801_p6 }
  0xa0   : > { %302 = vxpose.xlu0.b32.start.end [1/1] (short) %v298_v0, 128 }
  0xdf   : > { %v4084_v4 = vpop.trf.xlu0 }
  0xe3   : > { %v4090_v6 = vpop.trf.xlu0 }
  0xe7   : > { %v4092_v7 = vpop.trf.xlu0 }
  0xe8   : > { %3282 = vmatprep.mubr.msk.f32.mxu1 %vm367_vm1, %v4092_v7 }
  0xeb   : > { %v4096_v8 = vpop.trf.xlu0 }
  0xec   : > { %3283 = vmatmul.mubr.msk.f32.vlgmr.msra.gmra.mxu1 %vm367_vm1, %v4096_v8 }
  0xed   : > { %3304 = vmatpush3.msk.msra.mxu1 %vm464_vm0, %v725_v3 }
  0xef   : > { %v4101_v9 = vpop.trf.xlu0 }
  0xf0   : > { %3285 = vmatprep.mubr.msk.f32.mxu1 %vm367_vm1, %v4101_v9 }
  0xf3   : > { %v4105_v10 = vpop.trf.xlu0 }
  0xf4   : > { %3286 = vmatmul.mubr.msk.f32.gmra.mxu1 %vm367_vm1, %v4105_v10 }
  0xf7   : > { %v4109_v11 = vpop.trf.xlu0 }
  0xf8   : > { %3288 = vmatprep.mubr.msk.f32.mxu1 %vm367_vm1, %v4109_v11 }
  0xfb   : > { %v4113_v12 = vpop.trf.xlu0 }
  0xfc   : > { %3289 = vmatmul.mubr.msk.f32.gmra.mxu1 %vm367_vm1, %v4113_v12 }
  0xff   : > { %v4117_v13 = vpop.trf.xlu0 }
 0x100   : > { %3291 = vmatprep.mubr.msk.f32.mxu1 %vm367_vm1, %v4117_v13 }
 0x103   : > { %v4121_v14 = vpop.trf.xlu0 }
 0x104   : > { %3292 = vmatmul.mubr.msk.f32.gmra.mxu1 %vm367_vm1, %v4121_v14 }
 0x107   : > { %v4125_v15 = vpop.trf.xlu0 }
 0x108   : > { %3294 = vmatprep.mubr.msk.f32.mxu1 %vm367_vm1, %v4125_v15 }
 0x10b   : > { %v4129_v16 = vpop.trf.xlu0 }
 0x10c   : > { %3295 = vmatmul.mubr.msk.f32.gmra.mxu1 %vm367_vm1, %v4129_v16 }
 0x10f   : > { %v4133_v17 = vpop.trf.xlu0 }
 0x110   : > { %3297 = vmatprep.mubr.msk.f32.mxu1 %vm367_vm1, %v4133_v17 }
 0x113   : > { %v4137_v18 = vpop.trf.xlu0 }
 0x114   : > { %3298 = vmatmul.mubr.msk.f32.gmra.mxu1 %vm367_vm1, %v4137_v18 }
 0x117   : > { %v4141_v19 = vpop.trf.xlu0 }
 0x118   : > { %3300 = vmatprep.mubr.msk.f32.mxu1 %vm367_vm1, %v4141_v19 }
 0x11b   : > { %v4145_v20 = vpop.trf.xlu0 }
 0x11c   : > { %3301 = vmatmul.mubr.msk.f32.gmra.mxu1 %vm367_vm1, %v4145_v20 }
 0x11f   : > { %v318_v21 = vpop.trf.xlu0 }
 0x120   : > { %3255 = vmatprep.mubr.msk.f32.mxu0 %vm367_vm1, %v318_v21  ;;  %3305 = vmatprep.mubr.msk.f32.mxu1 %vm367_vm1, %v318_v21 }
 0x123   : > { %v319_v22 = vpop.trf.xlu0 }
 0x124   : > { %3256 = vmatmul.mubr.msk.f32.vlgmr.msra.gmra.mxu0 %vm367_vm1, %v319_v22  ;;  %3306 = vmatmul.mubr.msk.f32.vlgmr.msra.gmra.mxu1 %vm367_vm1, %v319_v22 }
 0x125   : > { %3354 = vmatpush3.msk.msra.mxu0 %vm464_vm0, %v986_v5 }
 0x126   : > { %2179 = vmatprep.subr.mxu0 %v3892_v45 }
 0x127   : > { %v320_v23 = vpop.trf.xlu0 }
 0x128   : > { %3258 = vmatprep.mubr.msk.f32.mxu0 %vm367_vm1, %v320_v23  ;;  %3308 = vmatprep.mubr.msk.f32.mxu1 %vm367_vm1, %v320_v23 }
 0x12b   : > { %v321_v24 = vpop.trf.xlu0 }
 0x12c   : > { %3259 = vmatmul.mubr.msk.f32.gmra.mxu0 %vm367_vm1, %v321_v24  ;;  %3309 = vmatmul.mubr.msk.f32.gmra.mxu1 %vm367_vm1, %v321_v24 }
 0x12f   : > { %v322_v25 = vpop.trf.xlu0 }
 0x130   : > { %3261 = vmatprep.mubr.msk.f32.mxu0 %vm367_vm1, %v322_v25  ;;  %3311 = vmatprep.mubr.msk.f32.mxu1 %vm367_vm1, %v322_v25 }
 0x133   : > { %v323_v26 = vpop.trf.xlu0 }
 0x134   : > { %3262 = vmatmul.mubr.msk.f32.gmra.mxu0 %vm367_vm1, %v323_v26  ;;  %3312 = vmatmul.mubr.msk.f32.gmra.mxu1 %vm367_vm1, %v323_v26 }
 0x137   : > { %v324_v27 = vpop.trf.xlu0 }
 0x138   : > { %3264 = vmatprep.mubr.msk.f32.mxu0 %vm367_vm1, %v324_v27  ;;  %3314 = vmatprep.mubr.msk.f32.mxu1 %vm367_vm1, %v324_v27 }
 0x13b   : > { %v325_v28 = vpop.trf.xlu0 }
 0x13c   : > { %3265 = vmatmul.mubr.msk.f32.gmra.mxu0 %vm367_vm1, %v325_v28  ;;  %3315 = vmatmul.mubr.msk.f32.gmra.mxu1 %vm367_vm1, %v325_v28 }
 0x13f   : > { %v326_v29 = vpop.trf.xlu0 }
 0x140   : > { %3267 = vmatprep.mubr.msk.f32.mxu0 %vm367_vm1, %v326_v29  ;;  %3317 = vmatprep.mubr.msk.f32.mxu1 %vm367_vm1, %v326_v29 }
 0x143   : > { %v327_v30 = vpop.trf.xlu0 }
 0x144   : > { %3268 = vmatmul.mubr.msk.f32.gmra.mxu0 %vm367_vm1, %v327_v30  ;;  %3318 = vmatmul.mubr.msk.f32.gmra.mxu1 %vm367_vm1, %v327_v30 }
 0x147   : > { %v328_v31 = vpop.trf.xlu0 }
 0x148   : > { %3270 = vmatprep.mubr.msk.f32.mxu0 %vm367_vm1, %v328_v31  ;;  %3320 = vmatprep.mubr.msk.f32.mxu1 %vm367_vm1, %v328_v31 }
 0x14b   : > { %v329_v32 = vpop.trf.xlu0 }
 0x14c   : > { %3271 = vmatmul.mubr.msk.f32.gmra.mxu0 %vm367_vm1, %v329_v32  ;;  %3321 = vmatmul.mubr.msk.f32.gmra.mxu1 %vm367_vm1, %v329_v32 }
 0x14f   : > { %v330_v33 = vpop.trf.xlu0 }
 0x150   : > { %3273 = vmatprep.mubr.msk.f32.mxu0 %vm367_vm1, %v330_v33  ;;  %3323 = vmatprep.mubr.msk.f32.mxu1 %vm367_vm1, %v330_v33 }
 0x153   : > { %v331_v34 = vpop.trf.xlu0 }
 0x154   : > { %3274 = vmatmul.mubr.msk.f32.gmra.mxu0 %vm367_vm1, %v331_v34  ;;  %3324 = vmatmul.mubr.msk.f32.gmra.mxu1 %vm367_vm1, %v331_v34 }
 0x157   : > { %v332_v35 = vpop.trf.xlu0 }
 0x158   : > { %3276 = vmatprep.mubr.msk.f32.mxu0 %vm367_vm1, %v332_v35  ;;  %3326 = vmatprep.mubr.msk.f32.mxu1 %vm367_vm1, %v332_v35 }
 0x15b   : > { %v333_v36 = vpop.trf.xlu0 }
 0x15c   : > { %3277 = vmatmul.mubr.msk.f32.gmra.mxu0 %vm367_vm1, %v333_v36  ;;  %3327 = vmatmul.mubr.msk.f32.gmra.mxu1 %vm367_vm1, %v333_v36 }
 0x15d   : > { %3279 = vmatprep.mubr.msk.f32.mxu0 %vm367_vm1, %v4084_v4  ;;  %3329 = vmatprep.mubr.msk.f32.mxu1 %vm367_vm1, %v4084_v4 }
 0x160   : > { %3280 = vmatmul.mubr.msk.f32.gmra.mxu0 %vm367_vm1, %v4090_v6  ;;  %3330 = vmatmul.mubr.msk.f32.gmra.mxu1 %vm367_vm1, %v4090_v6 }
 0x161   : > { %3332 = vmatprep.mubr.msk.f32.mxu1 %vm367_vm1, %v4092_v7  ;;  %3355 = vmatprep.mubr.msk.f32.mxu0 %vm367_vm1, %v318_v21 }
 0x164   : > { %3333 = vmatmul.mubr.msk.f32.gmra.mxu1 %vm367_vm1, %v4096_v8  ;;  %3356 = vmatmul.mubr.msk.f32.vlgmr.msra.gmra.mxu0 %vm367_vm1, %v319_v22 }
 0x165   : > { %3335 = vmatprep.mubr.msk.f32.mxu1 %vm367_vm1, %v4101_v9  ;;  %3358 = vmatprep.mubr.msk.f32.mxu0 %vm367_vm1, %v320_v23 }
 0x168   : > { %3336 = vmatmul.mubr.msk.f32.gmra.mxu1 %vm367_vm1, %v4105_v10  ;;  %3359 = vmatmul.mubr.msk.f32.gmra.mxu0 %vm367_vm1, %v321_v24 }
 0x169   : > { %3338 = vmatprep.mubr.msk.f32.mxu1 %vm367_vm1, %v4109_v11  ;;  %3361 = vmatprep.mubr.msk.f32.mxu0 %vm367_vm1, %v322_v25 }
 0x16c   : > { %3339 = vmatmul.mubr.msk.f32.gmra.mxu1 %vm367_vm1, %v4113_v12  ;;  %3362 = vmatmul.mubr.msk.f32.gmra.mxu0 %vm367_vm1, %v323_v26 }
 0x16d   : > { %3341 = vmatprep.mubr.msk.f32.mxu1 %vm367_vm1, %v4117_v13  ;;  %3364 = vmatprep.mubr.msk.f32.mxu0 %vm367_vm1, %v324_v27 }
 0x170   : > { %3342 = vmatmul.mubr.msk.f32.gmra.mxu1 %vm367_vm1, %v4121_v14  ;;  %3365 = vmatmul.mubr.msk.f32.gmra.mxu0 %vm367_vm1, %v325_v28 }
 0x171   : > { %3344 = vmatprep.mubr.msk.f32.mxu1 %vm367_vm1, %v4125_v15  ;;  %3367 = vmatprep.mubr.msk.f32.mxu0 %vm367_vm1, %v326_v29 }
 0x174   : > { %3345 = vmatmul.mubr.msk.f32.gmra.mxu1 %vm367_vm1, %v4129_v16  ;;  %3368 = vmatmul.mubr.msk.f32.gmra.mxu0 %vm367_vm1, %v327_v30 }
 0x175   : > { %3347 = vmatprep.mubr.msk.f32.mxu1 %vm367_vm1, %v4133_v17  ;;  %3370 = vmatprep.mubr.msk.f32.mxu0 %vm367_vm1, %v328_v31 }
 0x178   : > { %3348 = vmatmul.mubr.msk.f32.gmra.mxu1 %vm367_vm1, %v4137_v18  ;;  %3371 = vmatmul.mubr.msk.f32.gmra.mxu0 %vm367_vm1, %v329_v32 }
 0x179   : > { %3350 = vmatprep.mubr.msk.f32.mxu1 %vm367_vm1, %v4141_v19  ;;  %3373 = vmatprep.mubr.msk.f32.mxu0 %vm367_vm1, %v330_v33 }
 0x17c   : > { %3351 = vmatmul.mubr.msk.f32.gmra.mxu1 %vm367_vm1, %v4145_v20  ;;  %3374 = vmatmul.mubr.msk.f32.gmra.mxu0 %vm367_vm1, %v331_v34 }
 0x17d   : > { %3376 = vmatprep.mubr.msk.f32.mxu0 %vm367_vm1, %v332_v35 }
 0x180   : > { %3377 = vmatmul.mubr.msk.f32.gmra.mxu0 %vm367_vm1, %v333_v36 }
 0x181   : > { %3379 = vmatprep.mubr.msk.f32.mxu0 %vm367_vm1, %v4084_v4 }
 0x184   : > { %3380 = vmatmul.mubr.msk.f32.gmra.mxu0 %vm367_vm1, %v4090_v6 }
 0x185   : > { %3382 = vmatprep.mubr.msk.f32.mxu0 %vm367_vm1, %v4092_v7 }
 0x188   : > { %3383 = vmatmul.mubr.msk.f32.gmra.mxu0 %vm367_vm1, %v4096_v8 }
 0x189   : > { %3385 = vmatprep.mubr.msk.f32.mxu0 %vm367_vm1, %v4101_v9 }
 0x18c   : > { %3386 = vmatmul.mubr.msk.f32.gmra.mxu0 %vm367_vm1, %v4105_v10 }
 0x18d   : > { %3388 = vmatprep.mubr.msk.f32.mxu0 %vm367_vm1, %v4109_v11 }
 0x190   : > { %3389 = vmatmul.mubr.msk.f32.gmra.mxu0 %vm367_vm1, %v4113_v12 }
 0x191   : > { %3391 = vmatprep.mubr.msk.f32.mxu0 %vm367_vm1, %v4117_v13 }
 0x194   : > { %3392 = vmatmul.mubr.msk.f32.gmra.mxu0 %vm367_vm1, %v4121_v14 }
 0x195   : > { %3394 = vmatprep.mubr.msk.f32.mxu0 %vm367_vm1, %v4125_v15 }
 0x198   : > { %3395 = vmatmul.mubr.msk.f32.gmra.mxu0 %vm367_vm1, %v4129_v16 }
 0x199   : > { %3397 = vmatprep.mubr.msk.f32.mxu0 %vm367_vm1, %v4133_v17 }
 0x19c   : > { %3398 = vmatmul.mubr.msk.f32.gmra.mxu0 %vm367_vm1, %v4137_v18 }
 0x19d   : > { %3400 = vmatprep.mubr.msk.f32.mxu0 %vm367_vm1, %v4141_v19 }
 0x1a0   : > { %3401 = vmatmul.mubr.msk.f32.gmra.mxu0 %vm367_vm1, %v4145_v20 }
 0x1ac   : > { %v3284_v37 = vpop.f32.mrf.mxu1 }
 0x1ad   : > { %712 = vst.msk [vmem:[#allocation2 + $0x98] sm:$0xff] %vm367_vm1, %v3284_v37 }
 0x1ae   : > { %v624_v38 = vpop.f32.mrf.mxu1 }
 0x1af   : > { %711 = vst.msk [vmem:[#allocation2 + $0x90] sm:$0xff] %vm367_vm1, %v624_v38 }
 0x1b4   : > { %v3287_v39 = vpop.f32.mrf.mxu1 }
 0x1b5   : > { %714 = vst.msk [vmem:[#allocation2 + $0xa8] sm:$0xff] %vm367_vm1, %v3287_v39 }
 0x1b6   : > { %v634_v40 = vpop.f32.mrf.mxu1 }
 0x1b7   : > { %713 = vst.msk [vmem:[#allocation2 + $0xa0] sm:$0xff] %vm367_vm1, %v634_v40 }
 0x1bc   : > { %v3290_v41 = vpop.f32.mrf.mxu1 }
 0x1bd   : > { %716 = vst.msk [vmem:[#allocation2 + $0xb8] sm:$0xff] %vm367_vm1, %v3290_v41 }
 0x1be   : > { %v644_v42 = vpop.f32.mrf.mxu1 }
 0x1bf   : > { %715 = vst.msk [vmem:[#allocation2 + $0xb0] sm:$0xff] %vm367_vm1, %v644_v42 }
 0x1c4   : > { %v3293_v43 = vpop.f32.mrf.mxu1 }
 0x1c5   : > { %718 = vst.msk [vmem:[#allocation2 + $0xc8] sm:$0xff] %vm367_vm1, %v3293_v43 }
 0x1c6   : > { %v654_v44 = vpop.f32.mrf.mxu1 }
 0x1c7   : > { %717 = vst.msk [vmem:[#allocation2 + $0xc0] sm:$0xff] %vm367_vm1, %v654_v44 }
 0x1cc   : > { %v3296_v46 = vpop.f32.mrf.mxu1 }
 0x1cd   : > { %720 = vst.msk [vmem:[#allocation2 + $0xd8] sm:$0xff] %vm367_vm1, %v3296_v46 }
 0x1ce   : > { %v664_v47 = vpop.f32.mrf.mxu1 }
 0x1cf   : > { %719 = vst.msk [vmem:[#allocation2 + $0xd0] sm:$0xff] %vm367_vm1, %v664_v47 }
 0x1d4   : > { %v3299_v48 = vpop.f32.mrf.mxu1 }
 0x1d5   : > { %722 = vst.msk [vmem:[#allocation2 + $0xe8] sm:$0xff] %vm367_vm1, %v3299_v48 }
 0x1d6   : > { %v674_v49 = vpop.f32.mrf.mxu1 }
 0x1d7   : > { %721 = vst.msk [vmem:[#allocation2 + $0xe0] sm:$0xff] %vm367_vm1, %v674_v49 }
 0x1dc   : > { %v3302_v50 = vpop.f32.mrf.mxu1 }
 0x1dd   : > { %724 = vst.msk [vmem:[#allocation2 + $0xf8] sm:$0xff] %vm367_vm1, %v3302_v50 }
 0x1de   : > { %v684_v51 = vpop.f32.mrf.mxu1 }
 0x1df   : > { %723 = vst.msk [vmem:[#allocation2 + $0xf0] sm:$0xff] %vm367_vm1, %v684_v51 }
 0x1e4   : > { %v3257_v52 = vpop.f32.mrf.mxu0  ;;  %v3307_v53 = vpop.f32.mrf.mxu1 }
 0x1e5   : > { %694 = vst.msk [vmem:[#allocation2 + $0x8] sm:$0xff] %vm367_vm1, %v3257_v52  ;;  %955 = vst.msk [vmem:[#allocation3 + $0x8] sm:$0xff] %vm367_vm1, %v3307_v53 }
 0x1e6   : > { %v534_v54 = vpop.f32.mrf.mxu0  ;;  %v795_v55 = vpop.f32.mrf.mxu1 }
 0x1e7   : > { %693 = vst.msk [vmem:[#allocation2] sm:$0xff] %vm367_vm1, %v534_v54  ;;  %954 = vst.msk [vmem:[#allocation3] sm:$0xff] %vm367_vm1, %v795_v55 }
 0x1ec   : > { %v3260_v56 = vpop.f32.mrf.mxu0  ;;  %v3310_v57 = vpop.f32.mrf.mxu1 }
 0x1ed   : > { %696 = vst.msk [vmem:[#allocation2 + $0x18] sm:$0xff] %vm367_vm1, %v3260_v56  ;;  %957 = vst.msk [vmem:[#allocation3 + $0x18] sm:$0xff] %vm367_vm1, %v3310_v57 }
 0x1ee   : > { %v544_v58 = vpop.f32.mrf.mxu0  ;;  %v805_v59 = vpop.f32.mrf.mxu1  ;;  %v4287_v60 = vld [vmem:[#allocation2] sm:$0xff] }
 0x1ef   : > { %695 = vst.msk [vmem:[#allocation2 + $0x10] sm:$0xff] %vm367_vm1, %v544_v58  ;;  %956 = vst.msk [vmem:[#allocation3 + $0x10] sm:$0xff] %vm367_vm1, %v805_v59  ;;  %3155 = vmatprep.mubr.msk.f32.mxu1 %vm367_vm1, %v4287_v60 }
 0x1f4   : > { %v3263_v61 = vpop.f32.mrf.mxu0  ;;  %v3313_v62 = vpop.f32.mrf.mxu1 }
 0x1f5   : > { %698 = vst.msk [vmem:[#allocation2 + $0x28] sm:$0xff] %vm367_vm1, %v3263_v61  ;;  %959 = vst.msk [vmem:[#allocation3 + $0x28] sm:$0xff] %vm367_vm1, %v3313_v62 }
 0x1f6   : > { %v554_v63 = vpop.f32.mrf.mxu0  ;;  %v815_v0 = vpop.f32.mrf.mxu1 }
 0x1f7   : > { %697 = vst.msk [vmem:[#allocation2 + $0x20] sm:$0xff] %vm367_vm1, %v554_v63  ;;  %958 = vst.msk [vmem:[#allocation3 + $0x20] sm:$0xff] %vm367_vm1, %v815_v0 }
 0x1fc   : > { %v3266_v1 = vpop.f32.mrf.mxu0  ;;  %v3316_v2 = vpop.f32.mrf.mxu1 }
 0x1fd   : > { %700 = vst.msk [vmem:[#allocation2 + $0x38] sm:$0xff] %vm367_vm1, %v3266_v1  ;;  %961 = vst.msk [vmem:[#allocation3 + $0x38] sm:$0xff] %vm367_vm1, %v3316_v2 }
 0x1fe   : > { %v564_v3 = vpop.f32.mrf.mxu0  ;;  %v825_v4 = vpop.f32.mrf.mxu1 }
 0x1ff   : > { %699 = vst.msk [vmem:[#allocation2 + $0x30] sm:$0xff] %vm367_vm1, %v564_v3  ;;  %960 = vst.msk [vmem:[#allocation3 + $0x30] sm:$0xff] %vm367_vm1, %v825_v4 }
 0x204   : > { %v3269_v5 = vpop.f32.mrf.mxu0  ;;  %v3319_v6 = vpop.f32.mrf.mxu1 }
 0x205   : > { %702 = vst.msk [vmem:[#allocation2 + $0x48] sm:$0xff] %vm367_vm1, %v3269_v5  ;;  %963 = vst.msk [vmem:[#allocation3 + $0x48] sm:$0xff] %vm367_vm1, %v3319_v6 }
 0x206   : > { %v574_v7 = vpop.f32.mrf.mxu0  ;;  %v835_v8 = vpop.f32.mrf.mxu1 }
 0x207   : > { %701 = vst.msk [vmem:[#allocation2 + $0x40] sm:$0xff] %vm367_vm1, %v574_v7  ;;  %962 = vst.msk [vmem:[#allocation3 + $0x40] sm:$0xff] %vm367_vm1, %v835_v8 }
 0x20c   : > { %v3272_v9 = vpop.f32.mrf.mxu0  ;;  %v3322_v10 = vpop.f32.mrf.mxu1 }
 0x20d   : > { %704 = vst.msk [vmem:[#allocation2 + $0x58] sm:$0xff] %vm367_vm1, %v3272_v9  ;;  %965 = vst.msk [vmem:[#allocation3 + $0x58] sm:$0xff] %vm367_vm1, %v3322_v10 }
 0x20e   : > { %v584_v11 = vpop.f32.mrf.mxu0  ;;  %v845_v12 = vpop.f32.mrf.mxu1 }
 0x20f   : > { %703 = vst.msk [vmem:[#allocation2 + $0x50] sm:$0xff] %vm367_vm1, %v584_v11  ;;  %964 = vst.msk [vmem:[#allocation3 + $0x50] sm:$0xff] %vm367_vm1, %v845_v12 }
 0x214   : > { %v3275_v13 = vpop.f32.mrf.mxu0  ;;  %v3325_v14 = vpop.f32.mrf.mxu1 }
 0x215   : > { %706 = vst.msk [vmem:[#allocation2 + $0x68] sm:$0xff] %vm367_vm1, %v3275_v13  ;;  %967 = vst.msk [vmem:[#allocation3 + $0x68] sm:$0xff] %vm367_vm1, %v3325_v14 }
 0x216   : > { %v594_v15 = vpop.f32.mrf.mxu0  ;;  %v855_v16 = vpop.f32.mrf.mxu1 }
 0x217   : > { %705 = vst.msk [vmem:[#allocation2 + $0x60] sm:$0xff] %vm367_vm1, %v594_v15  ;;  %966 = vst.msk [vmem:[#allocation3 + $0x60] sm:$0xff] %vm367_vm1, %v855_v16 }
 0x21c   : > { %v3278_v17 = vpop.f32.mrf.mxu0  ;;  %v3328_v18 = vpop.f32.mrf.mxu1  ;;  %v1294_v6 = vld [vmem:[#allocation3 + $0x68] sm:$0xff] }
 0x21d   : > { %708 = vst.msk [vmem:[#allocation2 + $0x78] sm:$0xff] %vm367_vm1, %v3278_v17  ;;  %969 = vst.msk [vmem:[#allocation3 + $0x78] sm:$0xff] %vm367_vm1, %v3328_v18  ;;  %v1292_v18 = vld [vmem:[#allocation3 + $0x58] sm:$0xff] }
 0x21e   : > { %v604_v19 = vpop.f32.mrf.mxu0  ;;  %v865_v20 = vpop.f32.mrf.mxu1  ;;  %v1293_v12 = vld [vmem:[#allocation3 + $0x60] sm:$0xff] }
 0x21f   : > { %707 = vst.msk [vmem:[#allocation2 + $0x70] sm:$0xff] %vm367_vm1, %v604_v19  ;;  %968 = vst.msk [vmem:[#allocation3 + $0x70] sm:$0xff] %vm367_vm1, %v865_v20 }
 0x220   : > { %v3281_v21 = vpop.f32.mrf.mxu0  ;;  %v3331_v22 = vpop.f32.mrf.mxu1 }
 0x221   : > { %710 = vst.msk [vmem:[#allocation2 + $0x88] sm:$0xff] %vm367_vm1, %v3281_v21  ;;  %971 = vst.msk [vmem:[#allocation3 + $0x88] sm:$0xff] %vm367_vm1, %v3331_v22 }
 0x222   : > { %v614_v23 = vpop.f32.mrf.mxu0  ;;  %v875_v24 = vpop.f32.mrf.mxu1 }
 0x223   : > { %709 = vst.msk [vmem:[#allocation2 + $0x80] sm:$0xff] %vm367_vm1, %v614_v23  ;;  %970 = vst.msk [vmem:[#allocation3 + $0x80] sm:$0xff] %vm367_vm1, %v875_v24  ;;  %v1291_v24 = vld [vmem:[#allocation3 + $0x50] sm:$0xff] }
 0x224   : > { %v3334_v25 = vpop.f32.mrf.mxu1  ;;  %v3357_v26 = vpop.f32.mrf.mxu0  ;;  %v1296_v58 = vld [vmem:[#allocation3 + $0x78] sm:$0xff] }
 0x225   : > { %973 = vst.msk [vmem:[#allocation3 + $0x98] sm:$0xff] %vm367_vm1, %v3334_v25  ;;  %1216 = vst.msk [vmem:[#allocation4 + $0x8] sm:$0xff] %vm367_vm1, %v3357_v26 }
 0x226   : > { %v885_v27 = vpop.f32.mrf.mxu1  ;;  %v1056_v28 = vpop.f32.mrf.mxu0  ;;  %v1295_v0 = vld [vmem:[#allocation3 + $0x70] sm:$0xff] }
 0x227   : > { %972 = vst.msk [vmem:[#allocation3 + $0x90] sm:$0xff] %vm367_vm1, %v885_v27  ;;  %1215 = vst.msk [vmem:[#allocation4] sm:$0xff] %vm367_vm1, %v1056_v28 }
 0x228   : > { %v3337_v29 = vpop.f32.mrf.mxu1  ;;  %v3360_v30 = vpop.f32.mrf.mxu0 }
 0x229   : > { %975 = vst.msk [vmem:[#allocation3 + $0xa8] sm:$0xff] %vm367_vm1, %v3337_v29  ;;  %1218 = vst.msk [vmem:[#allocation4 + $0x18] sm:$0xff] %vm367_vm1, %v3360_v30  ;;  %v1290_v30 = vld [vmem:[#allocation3 + $0x48] sm:$0xff] }
 0x22a   : > { %v895_v31 = vpop.f32.mrf.mxu1  ;;  %v1066_v32 = vpop.f32.mrf.mxu0 }
 0x22b   : > { %974 = vst.msk [vmem:[#allocation3 + $0xa0] sm:$0xff] %vm367_vm1, %v895_v31  ;;  %1217 = vst.msk [vmem:[#allocation4 + $0x10] sm:$0xff] %vm367_vm1, %v1066_v32 }
 0x22c   : > { %v3340_v33 = vpop.f32.mrf.mxu1  ;;  %v3363_v34 = vpop.f32.mrf.mxu0 }
 0x22d   : > { %977 = vst.msk [vmem:[#allocation3 + $0xb8] sm:$0xff] %vm367_vm1, %v3340_v33  ;;  %1220 = vst.msk [vmem:[#allocation4 + $0x28] sm:$0xff] %vm367_vm1, %v3363_v34 }
 0x22e   : > { %v905_v35 = vpop.f32.mrf.mxu1  ;;  %v1076_v36 = vpop.f32.mrf.mxu0 }
 0x22f   : > { %976 = vst.msk [vmem:[#allocation3 + $0xb0] sm:$0xff] %vm367_vm1, %v905_v35  ;;  %1219 = vst.msk [vmem:[#allocation4 + $0x20] sm:$0xff] %vm367_vm1, %v1076_v36  ;;  %v1289_v36 = vld [vmem:[#allocation3 + $0x40] sm:$0xff] }
 0x230   : > { %v3343_v37 = vpop.f32.mrf.mxu1  ;;  %v3366_v38 = vpop.f32.mrf.mxu0  ;;  %v1316_v35 = vld [vmem:[#allocation4 + $0x18] sm:$0xff] }
 0x231   : > { %979 = vst.msk [vmem:[#allocation3 + $0xc8] sm:$0xff] %vm367_vm1, %v3343_v37  ;;  %1222 = vst.msk [vmem:[#allocation4 + $0x38] sm:$0xff] %vm367_vm1, %v3366_v38 }
 0x232   : > { %v915_v39 = vpop.f32.mrf.mxu1  ;;  %v1086_v40 = vpop.f32.mrf.mxu0 }
 0x233   : > { %978 = vst.msk [vmem:[#allocation3 + $0xc0] sm:$0xff] %vm367_vm1, %v915_v39  ;;  %1221 = vst.msk [vmem:[#allocation4 + $0x30] sm:$0xff] %vm367_vm1, %v1086_v40  ;;  %v1315_v39 = vld [vmem:[#allocation4 + $0x10] sm:$0xff]  ;;  %v1314_v40 = vld [vmem:[#allocation4 + $0x8] sm:$0xff] }
 0x234   : > { %v3346_v41 = vpop.f32.mrf.mxu1  ;;  %v3369_v42 = vpop.f32.mrf.mxu0  ;;  %v1318_v29 = vld [vmem:[#allocation4 + $0x28] sm:$0xff]  ;;  %v1304_v38 = vld [vmem:[#allocation3 + $0xb8] sm:$0xff] }
 0x235   : > { %981 = vst.msk [vmem:[#allocation3 + $0xd8] sm:$0xff] %vm367_vm1, %v3346_v41  ;;  %1224 = vst.msk [vmem:[#allocation4 + $0x48] sm:$0xff] %vm367_vm1, %v3369_v42  ;;  %v1288_v41 = vld [vmem:[#allocation3 + $0x38] sm:$0xff] }
 0x236   : > { %v925_v43 = vpop.f32.mrf.mxu1  ;;  %v1096_v44 = vpop.f32.mrf.mxu0  ;;  %v1317_v33 = vld [vmem:[#allocation4 + $0x20] sm:$0xff]  ;;  %v1303_v42 = vld [vmem:[#allocation3 + $0xb0] sm:$0xff] }
 0x237   : > { %980 = vst.msk [vmem:[#allocation3 + $0xd0] sm:$0xff] %vm367_vm1, %v925_v43  ;;  %1223 = vst.msk [vmem:[#allocation4 + $0x40] sm:$0xff] %vm367_vm1, %v1096_v44  ;;  %v1313_v43 = vld [vmem:[#allocation4] sm:$0xff] }
 0x238   : > { %v3349_v46 = vpop.f32.mrf.mxu1  ;;  %v3372_v47 = vpop.f32.mrf.mxu0  ;;  %v1320_v23 = vld [vmem:[#allocation4 + $0x38] sm:$0xff]  ;;  %v1306_v26 = vld [vmem:[#allocation3 + $0xc8] sm:$0xff] }
 0x239   : > { %983 = vst.msk [vmem:[#allocation3 + $0xe8] sm:$0xff] %vm367_vm1, %v3349_v46  ;;  %1226 = vst.msk [vmem:[#allocation4 + $0x58] sm:$0xff] %vm367_vm1, %v3372_v47  ;;  %v1287_v46 = vld [vmem:[#allocation3 + $0x30] sm:$0xff]  ;;  %v1302_v47 = vld [vmem:[#allocation3 + $0xa8] sm:$0xff] }
 0x23a   : > { %v935_v48 = vpop.f32.mrf.mxu1  ;;  %v1106_v49 = vpop.f32.mrf.mxu0  ;;  %v1319_v27 = vld [vmem:[#allocation4 + $0x30] sm:$0xff]  ;;  %v1305_v32 = vld [vmem:[#allocation3 + $0xc0] sm:$0xff] }
 0x23b   : > { %982 = vst.msk [vmem:[#allocation3 + $0xe0] sm:$0xff] %vm367_vm1, %v935_v48  ;;  %1225 = vst.msk [vmem:[#allocation4 + $0x50] sm:$0xff] %vm367_vm1, %v1106_v49 }
 0x23c   : > { %v3352_v50 = vpop.f32.mrf.mxu1  ;;  %v3375_v51 = vpop.f32.mrf.mxu0  ;;  %v1308_v14 = vld [vmem:[#allocation3 + $0xd8] sm:$0xff]  ;;  %v1322_v17 = vld [vmem:[#allocation4 + $0x48] sm:$0xff] }
 0x23d   : > { %985 = vst.msk [vmem:[#allocation3 + $0xf8] sm:$0xff] %vm367_vm1, %v3352_v50  ;;  %1228 = vst.msk [vmem:[#allocation4 + $0x68] sm:$0xff] %vm367_vm1, %v3375_v51  ;;  %v1286_v50 = vld [vmem:[#allocation3 + $0x28] sm:$0xff]  ;;  %v1301_v51 = vld [vmem:[#allocation3 + $0xa0] sm:$0xff] }
 0x23e   : > { %v945_v52 = vpop.f32.mrf.mxu1  ;;  %v1116_v53 = vpop.f32.mrf.mxu0  ;;  %v1307_v20 = vld [vmem:[#allocation3 + $0xd0] sm:$0xff]  ;;  %v1321_v21 = vld [vmem:[#allocation4 + $0x40] sm:$0xff] }
 0x23f   : > { %984 = vst.msk [vmem:[#allocation3 + $0xf0] sm:$0xff] %vm367_vm1, %v945_v52  ;;  %1227 = vst.msk [vmem:[#allocation4 + $0x60] sm:$0xff] %vm367_vm1, %v1116_v53 }
 0x240   : > { %v3378_v54 = vpop.f32.mrf.mxu0  ;;  %v1310_v2 = vld [vmem:[#allocation3 + $0xe8] sm:$0xff]  ;;  %v1324_v11 = vld [vmem:[#allocation4 + $0x58] sm:$0xff] }
 0x241   : > { %1230 = vst.msk [vmem:[#allocation4 + $0x78] sm:$0xff] %vm367_vm1, %v3378_v54  ;;  %v1285_v54 = vld [vmem:[#allocation3 + $0x20] sm:$0xff] }
 0x242   : > { %v1126_v55 = vpop.f32.mrf.mxu0  ;;  %v1309_v8 = vld [vmem:[#allocation3 + $0xe0] sm:$0xff]  ;;  %v1323_v15 = vld [vmem:[#allocation4 + $0x50] sm:$0xff] }
 0x243   : > { %1229 = vst.msk [vmem:[#allocation4 + $0x70] sm:$0xff] %vm367_vm1, %v1126_v55  ;;  %v1300_v55 = vld [vmem:[#allocation3 + $0x98] sm:$0xff] }
 0x244   : > { %v3381_v56 = vpop.f32.mrf.mxu0  ;;  %v1312_v57 = vld [vmem:[#allocation3 + $0xf8] sm:$0xff]  ;;  %v1326_v5 = vld [vmem:[#allocation4 + $0x68] sm:$0xff] }
 0x245   : > { %1232 = vst.msk [vmem:[#allocation4 + $0x88] sm:$0xff] %vm367_vm1, %v3381_v56  ;;  %3123 = vmatprep.subr.msk.mxu1 %vm367_vm1, %v1312_v57 }
 0x246   : > { %v1136_v59 = vpop.f32.mrf.mxu0  ;;  %3124 = vmatpush3.xpose.msk.msra.mxu1 %vm367_vm1, %v1296_v58  ;;  %v1311_v61 = vld [vmem:[#allocation3 + $0xf0] sm:$0xff]  ;;  %v1325_v9 = vld [vmem:[#allocation4 + $0x60] sm:$0xff]  ;;  %v1284_v58 = vld [vmem:[#allocation3 + $0x18] sm:$0xff] }
 0x247   : > { %1231 = vst.msk [vmem:[#allocation4 + $0x80] sm:$0xff] %vm367_vm1, %v1136_v59  ;;  %3125 = vmatprep.subr.msk.mxu1 %vm367_vm1, %v1311_v61  ;;  %v1299_v59 = vld [vmem:[#allocation3 + $0x90] sm:$0xff] }
 0x248   : > { %v3384_v62 = vpop.f32.mrf.mxu0  ;;  %v1328_v63 = vld [vmem:[#allocation4 + $0x78] sm:$0xff] }
 0x249   : > { %1234 = vst.msk [vmem:[#allocation4 + $0x98] sm:$0xff] %vm367_vm1, %v3384_v62  ;;  %2180 = vmatpush1.msra.mxu0 %v1328_v63  ;;  %v1283_v63 = vld [vmem:[#allocation3 + $0x10] sm:$0xff] }
 0x24a   : > { %v1146_v1 = vpop.f32.mrf.mxu0  ;;  %3126 = vmatpush3.xpose.msk.msra.mxu1 %vm367_vm1, %v1295_v0  ;;  %2181 = vmatprep.subr.mxu0 %v3892_v45  ;;  %v1327_v3 = vld [vmem:[#allocation4 + $0x70] sm:$0xff]  ;;  %v1298_v0 = vld [vmem:[#allocation3 + $0x88] sm:$0xff] }
 0x24b   : > { %1233 = vst.msk [vmem:[#allocation4 + $0x90] sm:$0xff] %vm367_vm1, %v1146_v1  ;;  %3127 = vmatprep.subr.msk.mxu1 %vm367_vm1, %v1310_v2  ;;  %2182 = vmatpush1.msra.mxu0 %v1327_v3  ;;  %v1282_v3 = vld [vmem:[#allocation3 + $0x8] sm:$0xff] }
 0x24c   : > { %v3387_v4 = vpop.f32.mrf.mxu0  ;;  %2183 = vmatprep.subr.mxu0 %v3892_v45 }
 0x24d   : > { %1236 = vst.msk [vmem:[#allocation4 + $0xa8] sm:$0xff] %vm367_vm1, %v3387_v4  ;;  %2184 = vmatpush1.msra.mxu0 %v1326_v5  ;;  %v1297_v4 = vld [vmem:[#allocation3 + $0x80] sm:$0xff] }
 0x24e   : > { %v1156_v7 = vpop.f32.mrf.mxu0  ;;  %3128 = vmatpush3.xpose.msk.msra.mxu1 %vm367_vm1, %v1294_v6  ;;  %2185 = vmatprep.subr.mxu0 %v3892_v45 }
 0x24f   : > { %1235 = vst.msk [vmem:[#allocation4 + $0xa0] sm:$0xff] %vm367_vm1, %v1156_v7  ;;  %3129 = vmatprep.subr.msk.mxu1 %vm367_vm1, %v1309_v8  ;;  %2186 = vmatpush1.msra.mxu0 %v1325_v9  ;;  %v1281_v7 = vld [vmem:[#allocation3] sm:$0xff]  ;;  %v1330_v9 = vld [vmem:[#allocation4 + $0x88] sm:$0xff] }
 0x250   : > { %v3390_v10 = vpop.f32.mrf.mxu0  ;;  %2187 = vmatprep.subr.mxu0 %v3892_v45  ;;  %v1332_v6 = vld [vmem:[#allocation4 + $0x98] sm:$0xff] }
 0x251   : > { %1238 = vst.msk [vmem:[#allocation4 + $0xb8] sm:$0xff] %vm367_vm1, %v3390_v10  ;;  %2188 = vmatpush1.msra.mxu0 %v1324_v11  ;;  %v1250_v10 = vld [vmem:[#allocation2 + $0x8] sm:$0xff]  ;;  %v1329_v11 = vld [vmem:[#allocation4 + $0x80] sm:$0xff] }
 0x252   : > { %v1166_v13 = vpop.f32.mrf.mxu0  ;;  %3130 = vmatpush3.xpose.msk.msra.mxu1 %vm367_vm1, %v1293_v12  ;;  %2189 = vmatprep.subr.mxu0 %v3892_v45  ;;  %v1331_v8 = vld [vmem:[#allocation4 + $0x90] sm:$0xff] }
 0x253   : > { %1237 = vst.msk [vmem:[#allocation4 + $0xb0] sm:$0xff] %vm367_vm1, %v1166_v13  ;;  %3131 = vmatprep.subr.msk.mxu1 %vm367_vm1, %v1308_v14  ;;  %2190 = vmatpush1.msra.mxu0 %v1323_v15  ;;  %v1251_v12 = vld [vmem:[#allocation2 + $0x10] sm:$0xff]  ;;  %v1252_v13 = vld [vmem:[#allocation2 + $0x18] sm:$0xff] }
 0x254   : > { %v3393_v16 = vpop.f32.mrf.mxu0  ;;  %2191 = vmatprep.subr.mxu0 %v3892_v45  ;;  %v1334_v2 = vld [vmem:[#allocation4 + $0xa8] sm:$0xff]  ;;  %v1255_v14 = vld [vmem:[#allocation2 + $0x30] sm:$0xff]  ;;  %v1256_v15 = vld [vmem:[#allocation2 + $0x38] sm:$0xff] }
 0x255   : > { %1240 = vst.msk [vmem:[#allocation4 + $0xc8] sm:$0xff] %vm367_vm1, %v3393_v16  ;;  %2192 = vmatpush1.msra.mxu0 %v1322_v17  ;;  %v1257_v16 = vld [vmem:[#allocation2 + $0x40] sm:$0xff]  ;;  %v1258_v17 = vld [vmem:[#allocation2 + $0x48] sm:$0xff] }
 0x256   : > { %v1176_v19 = vpop.f32.mrf.mxu0  ;;  %3132 = vmatpush3.xpose.msk.msra.mxu1 %vm367_vm1, %v1292_v18  ;;  %2193 = vmatprep.subr.mxu0 %v3892_v45  ;;  %v1333_v5 = vld [vmem:[#allocation4 + $0xa0] sm:$0xff]  ;;  %v1259_v18 = vld [vmem:[#allocation2 + $0x50] sm:$0xff] }
 0x257   : > { %1239 = vst.msk [vmem:[#allocation4 + $0xc0] sm:$0xff] %vm367_vm1, %v1176_v19  ;;  %3133 = vmatprep.subr.msk.mxu1 %vm367_vm1, %v1307_v20  ;;  %2194 = vmatpush1.msra.mxu0 %v1321_v21  ;;  %v1260_v19 = vld [vmem:[#allocation2 + $0x58] sm:$0xff]  ;;  %v1261_v20 = vld [vmem:[#allocation2 + $0x60] sm:$0xff]  ;;  %v1262_v21 = vld [vmem:[#allocation2 + $0x68] sm:$0xff] }
 0x258   : > { %v3396_v22 = vpop.f32.mrf.mxu0  ;;  %2195 = vmatprep.subr.mxu0 %v3892_v45  ;;  %v1336_v62 = vld [vmem:[#allocation4 + $0xb8] sm:$0xff] }
 0x259   : > { %1242 = vst.msk [vmem:[#allocation4 + $0xd8] sm:$0xff] %vm367_vm1, %v3396_v22  ;;  %2196 = vmatpush1.msra.mxu0 %v1320_v23  ;;  %v1263_v22 = vld [vmem:[#allocation2 + $0x70] sm:$0xff]  ;;  %v1264_v23 = vld [vmem:[#allocation2 + $0x78] sm:$0xff] }
 0x25a   : > { %v1186_v25 = vpop.f32.mrf.mxu0  ;;  %3134 = vmatpush3.xpose.msk.msra.mxu1 %vm367_vm1, %v1291_v24  ;;  %2197 = vmatprep.subr.mxu0 %v3892_v45  ;;  %v1335_v1 = vld [vmem:[#allocation4 + $0xb0] sm:$0xff]  ;;  %v1265_v24 = vld [vmem:[#allocation2 + $0x80] sm:$0xff] }
 0x25b   : > { %1241 = vst.msk [vmem:[#allocation4 + $0xd0] sm:$0xff] %vm367_vm1, %v1186_v25  ;;  %3135 = vmatprep.subr.msk.mxu1 %vm367_vm1, %v1306_v26  ;;  %2198 = vmatpush1.msra.mxu0 %v1319_v27  ;;  %v1266_v25 = vld [vmem:[#allocation2 + $0x88] sm:$0xff]  ;;  %v1267_v26 = vld [vmem:[#allocation2 + $0x90] sm:$0xff]  ;;  %v1268_v27 = vld [vmem:[#allocation2 + $0x98] sm:$0xff] }
 0x25c   : > { %v3399_v28 = vpop.f32.mrf.mxu0  ;;  %2199 = vmatprep.subr.mxu0 %v3892_v45  ;;  %v1338_v57 = vld [vmem:[#allocation4 + $0xc8] sm:$0xff] }
 0x25d   : > { %1244 = vst.msk [vmem:[#allocation4 + $0xe8] sm:$0xff] %vm367_vm1, %v3399_v28  ;;  %2200 = vmatpush1.msra.mxu0 %v1318_v29  ;;  %v1269_v28 = vld [vmem:[#allocation2 + $0xa0] sm:$0xff]  ;;  %v1270_v29 = vld [vmem:[#allocation2 + $0xa8] sm:$0xff] }
 0x25e   : > { %v1196_v31 = vpop.f32.mrf.mxu0  ;;  %3136 = vmatpush3.xpose.msk.msra.mxu1 %vm367_vm1, %v1290_v30  ;;  %2201 = vmatprep.subr.mxu0 %v3892_v45  ;;  %v1337_v61 = vld [vmem:[#allocation4 + $0xc0] sm:$0xff]  ;;  %v1271_v30 = vld [vmem:[#allocation2 + $0xb0] sm:$0xff] }
 0x25f   : > { %1243 = vst.msk [vmem:[#allocation4 + $0xe0] sm:$0xff] %vm367_vm1, %v1196_v31  ;;  %3137 = vmatprep.subr.msk.mxu1 %vm367_vm1, %v1305_v32  ;;  %2202 = vmatpush1.msra.mxu0 %v1317_v33  ;;  %v1272_v31 = vld [vmem:[#allocation2 + $0xb8] sm:$0xff]  ;;  %v1273_v32 = vld [vmem:[#allocation2 + $0xc0] sm:$0xff]  ;;  %v1274_v33 = vld [vmem:[#allocation2 + $0xc8] sm:$0xff] }
 0x260   : > { %v3402_v34 = vpop.f32.mrf.mxu0  ;;  %2203 = vmatprep.subr.mxu0 %v3892_v45  ;;  %v1340_v53 = vld [vmem:[#allocation4 + $0xd8] sm:$0xff] }
 0x261   : > { %1246 = vst.msk [vmem:[#allocation4 + $0xf8] sm:$0xff] %vm367_vm1, %v3402_v34  ;;  %2204 = vmatpush1.msra.mxu0 %v1316_v35  ;;  %v1275_v34 = vld [vmem:[#allocation2 + $0xd0] sm:$0xff]  ;;  %v1276_v35 = vld [vmem:[#allocation2 + $0xd8] sm:$0xff] }
 0x262   : > { %v1206_v37 = vpop.f32.mrf.mxu0  ;;  %3138 = vmatpush3.xpose.msk.msra.mxu1 %vm367_vm1, %v1289_v36  ;;  %2205 = vmatprep.subr.mxu0 %v3892_v45  ;;  %v1339_v56 = vld [vmem:[#allocation4 + $0xd0] sm:$0xff]  ;;  %v1277_v36 = vld [vmem:[#allocation2 + $0xe0] sm:$0xff] }
 0x263   : > { %1245 = vst.msk [vmem:[#allocation4 + $0xf0] sm:$0xff] %vm367_vm1, %v1206_v37  ;;  %3139 = vmatprep.subr.msk.mxu1 %vm367_vm1, %v1304_v38  ;;  %2206 = vmatpush1.msra.mxu0 %v1315_v39  ;;  %v1278_v37 = vld [vmem:[#allocation2 + $0xe8] sm:$0xff]  ;;  %v1279_v38 = vld [vmem:[#allocation2 + $0xf0] sm:$0xff]  ;;  %v1280_v39 = vld [vmem:[#allocation2 + $0xf8] sm:$0xff] }
 0x264   : > { %2207 = vmatprep.subr.mxu0 %v3892_v45  ;;  %v1342_v49 = vld [vmem:[#allocation4 + $0xe8] sm:$0xff] }
 0x265   : > { %2208 = vmatpush1.msra.mxu0 %v1314_v40 }
 0x266   : > { %3140 = vmatpush3.xpose.msk.msra.mxu1 %vm367_vm1, %v1288_v41  ;;  %2209 = vmatprep.subr.mxu0 %v3892_v45  ;;  %v1341_v52 = vld [vmem:[#allocation4 + $0xe0] sm:$0xff] }
 0x267   : > { %3141 = vmatprep.subr.msk.mxu1 %vm367_vm1, %v1303_v42  ;;  %2210 = vmatpush1.msra.mxu0 %v1313_v43 }
 0x268   : > { %2211 = vmatprep.subr.mxu0 %v3892_v45  ;;  %v1344_v44 = vld [vmem:[#allocation4 + $0xf8] sm:$0xff] }
 0x269   : > { %2212 = vmatpush2.msra.mxu0 %v1344_v44 }
 0x26a   : > { %3142 = vmatpush3.xpose.msk.msra.mxu1 %vm367_vm1, %v1287_v46  ;;  %2213 = vmatprep.subr.mxu0 %v3892_v45  ;;  %v1343_v48 = vld [vmem:[#allocation4 + $0xf0] sm:$0xff] }
 0x26b   : > { %3143 = vmatprep.subr.msk.mxu1 %vm367_vm1, %v1302_v47  ;;  %2214 = vmatpush2.msra.mxu0 %v1343_v48 }
 0x26c   : > { %2215 = vmatprep.subr.mxu0 %v3892_v45 }
 0x26d   : > { %2216 = vmatpush2.msra.mxu0 %v1342_v49 }
 0x26e   : > { %3144 = vmatpush3.xpose.msk.msra.mxu1 %vm367_vm1, %v1286_v50  ;;  %2217 = vmatprep.subr.mxu0 %v3892_v45 }
 0x26f   : > { %3145 = vmatprep.subr.msk.mxu1 %vm367_vm1, %v1301_v51  ;;  %2218 = vmatpush2.msra.mxu0 %v1341_v52 }
 0x270   : > { %2219 = vmatprep.subr.mxu0 %v3892_v45 }
 0x271   : > { %2220 = vmatpush2.msra.mxu0 %v1340_v53 }
 0x272   : > { %3146 = vmatpush3.xpose.msk.msra.mxu1 %vm367_vm1, %v1285_v54  ;;  %2221 = vmatprep.subr.mxu0 %v3892_v45 }
 0x273   : > { %3147 = vmatprep.subr.msk.mxu1 %vm367_vm1, %v1300_v55  ;;  %2222 = vmatpush2.msra.mxu0 %v1339_v56 }
 0x274   : > { %2223 = vmatprep.subr.mxu0 %v3892_v45 }
 0x275   : > { %2224 = vmatpush2.msra.mxu0 %v1338_v57 }
 0x276   : > { %3148 = vmatpush3.xpose.msk.msra.mxu1 %vm367_vm1, %v1284_v58  ;;  %2225 = vmatprep.subr.mxu0 %v3892_v45 }
 0x277   : > { %3149 = vmatprep.subr.msk.mxu1 %vm367_vm1, %v1299_v59  ;;  %2226 = vmatpush2.msra.mxu0 %v1337_v61 }
 0x278   : > { %2227 = vmatprep.subr.mxu0 %v3892_v45 }
 0x279   : > { %2228 = vmatpush2.msra.mxu0 %v1336_v62 }
 0x27a   : > { %3150 = vmatpush3.xpose.msk.msra.mxu1 %vm367_vm1, %v1283_v63  ;;  %2229 = vmatprep.subr.mxu0 %v3892_v45 }
 0x27b   : > { %3151 = vmatprep.subr.msk.mxu1 %vm367_vm1, %v1298_v0  ;;  %2230 = vmatpush2.msra.mxu0 %v1335_v1 }
 0x27c   : > { %2231 = vmatprep.subr.mxu0 %v3892_v45 }
 0x27d   : > { %2232 = vmatpush2.msra.mxu0 %v1334_v2 }
 0x27e   : > { %3152 = vmatpush3.xpose.msk.msra.mxu1 %vm367_vm1, %v1282_v3  ;;  %2233 = vmatprep.subr.mxu0 %v3892_v45 }
 0x27f   : > { %3153 = vmatprep.subr.msk.mxu1 %vm367_vm1, %v1297_v4  ;;  %2234 = vmatpush2.msra.mxu0 %v1333_v5 }
 0x280   : > { %2235 = vmatprep.subr.mxu0 %v3892_v45 }
 0x281   : > { %2236 = vmatpush2.msra.mxu0 %v1332_v6 }
 0x282   : > { %3154 = vmatpush3.xpose.msk.msra.mxu1 %vm367_vm1, %v1281_v7  ;;  %2237 = vmatprep.subr.mxu0 %v3892_v45 }
 0x283   : > { %2238 = vmatpush2.msra.mxu0 %v1331_v8 }
 0x284   : > { %2239 = vmatprep.subr.mxu0 %v3892_v45 }
 0x285   : > { %3156 = vmatmul.mubr.msk.f32.vlgmr.msra.gmra.mxu1 %vm367_vm1, %v4287_v60  ;;  %2240 = vmatpush2.msra.mxu0 %v1330_v9  ;;  %v1253_v60 = vld [vmem:[#allocation2 + $0x20] sm:$0xff] }
 0x286   : > { %3157 = vmatprep.mubr.msk.f32.mxu1 %vm367_vm1, %v1250_v10  ;;  %2241 = vmatprep.subr.mxu0 %v3892_v45  ;;  %v1254_v45 = vld [vmem:[#allocation2 + $0x28] sm:$0xff] }
 0x287   : > { %2242 = vmatpush2.msra.mxu0 %v1329_v11 }
 0x289   : > { %3158 = vmatmul.mubr.msk.f32.gmra.mxu1 %vm367_vm1, %v1250_v10 }
 0x28a   : > { %3159 = vmatprep.mubr.msk.f32.mxu1 %vm367_vm1, %v1251_v12 }
 0x28d   : > { %3160 = vmatmul.mubr.msk.f32.gmra.mxu1 %vm367_vm1, %v1251_v12 }
 0x28e   : > { %3161 = vmatprep.mubr.msk.f32.mxu1 %vm367_vm1, %v1252_v13 }
 0x291   : > { %3162 = vmatmul.mubr.msk.f32.gmra.mxu1 %vm367_vm1, %v1252_v13 }
 0x292   : > { %3163 = vmatprep.mubr.msk.f32.mxu1 %vm367_vm1, %v1253_v60 }
 0x295   : > { %3164 = vmatmul.mubr.msk.f32.gmra.mxu1 %vm367_vm1, %v1253_v60 }
 0x296   : > { %3165 = vmatprep.mubr.msk.f32.mxu1 %vm367_vm1, %v1254_v45 }
 0x299   : > { %3166 = vmatmul.mubr.msk.f32.gmra.mxu1 %vm367_vm1, %v1254_v45 }
 0x29a   : > { %3167 = vmatprep.mubr.msk.f32.mxu1 %vm367_vm1, %v1255_v14 }
 0x29d   : > { %3168 = vmatmul.mubr.msk.f32.gmra.mxu1 %vm367_vm1, %v1255_v14 }
 0x29e   : > { %3169 = vmatprep.mubr.msk.f32.mxu1 %vm367_vm1, %v1256_v15 }
 0x2a1   : > { %3170 = vmatmul.mubr.msk.f32.gmra.mxu1 %vm367_vm1, %v1256_v15 }
 0x2a2   : > { %3171 = vmatprep.mubr.msk.f32.mxu1 %vm367_vm1, %v1257_v16 }
 0x2a5   : > { %3172 = vmatmul.mubr.msk.f32.gmra.mxu1 %vm367_vm1, %v1257_v16 }
 0x2a6   : > { %3173 = vmatprep.mubr.msk.f32.mxu1 %vm367_vm1, %v1258_v17 }
 0x2a9   : > { %3174 = vmatmul.mubr.msk.f32.gmra.mxu1 %vm367_vm1, %v1258_v17 }
 0x2aa   : > { %3175 = vmatprep.mubr.msk.f32.mxu1 %vm367_vm1, %v1259_v18 }
 0x2ad   : > { %3176 = vmatmul.mubr.msk.f32.gmra.mxu1 %vm367_vm1, %v1259_v18 }
 0x2ae   : > { %3177 = vmatprep.mubr.msk.f32.mxu1 %vm367_vm1, %v1260_v19 }
 0x2b1   : > { %3178 = vmatmul.mubr.msk.f32.gmra.mxu1 %vm367_vm1, %v1260_v19 }
 0x2b2   : > { %3179 = vmatprep.mubr.msk.f32.mxu1 %vm367_vm1, %v1261_v20 }
 0x2b5   : > { %3180 = vmatmul.mubr.msk.f32.gmra.mxu1 %vm367_vm1, %v1261_v20 }
 0x2b6   : > { %3181 = vmatprep.mubr.msk.f32.mxu1 %vm367_vm1, %v1262_v21 }
 0x2b9   : > { %3182 = vmatmul.mubr.msk.f32.gmra.mxu1 %vm367_vm1, %v1262_v21 }
 0x2ba   : > { %3183 = vmatprep.mubr.msk.f32.mxu1 %vm367_vm1, %v1263_v22 }
 0x2bd   : > { %3184 = vmatmul.mubr.msk.f32.gmra.mxu1 %vm367_vm1, %v1263_v22 }
 0x2be   : > { %3185 = vmatprep.mubr.msk.f32.mxu1 %vm367_vm1, %v1264_v23 }
 0x2c1   : > { %3186 = vmatmul.mubr.msk.f32.gmra.mxu1 %vm367_vm1, %v1264_v23 }
 0x2c2   : > { %3187 = vmatprep.mubr.msk.f32.mxu1 %vm367_vm1, %v1265_v24 }
 0x2c5   : > { %3188 = vmatmul.mubr.msk.f32.gmra.mxu1 %vm367_vm1, %v1265_v24 }
 0x2c6   : > { %3189 = vmatprep.mubr.msk.f32.mxu1 %vm367_vm1, %v1266_v25 }
 0x2c9   : > { %3190 = vmatmul.mubr.msk.f32.gmra.mxu1 %vm367_vm1, %v1266_v25 }
 0x2ca   : > { %3191 = vmatprep.mubr.msk.f32.mxu1 %vm367_vm1, %v1267_v26 }
 0x2cd   : > { %3192 = vmatmul.mubr.msk.f32.gmra.mxu1 %vm367_vm1, %v1267_v26 }
 0x2ce   : > { %3193 = vmatprep.mubr.msk.f32.mxu1 %vm367_vm1, %v1268_v27 }
 0x2d1   : > { %3194 = vmatmul.mubr.msk.f32.gmra.mxu1 %vm367_vm1, %v1268_v27 }
 0x2d2   : > { %3195 = vmatprep.mubr.msk.f32.mxu1 %vm367_vm1, %v1269_v28 }
 0x2d5   : > { %3196 = vmatmul.mubr.msk.f32.gmra.mxu1 %vm367_vm1, %v1269_v28 }
 0x2d6   : > { %3197 = vmatprep.mubr.msk.f32.mxu1 %vm367_vm1, %v1270_v29 }
 0x2d9   : > { %3198 = vmatmul.mubr.msk.f32.gmra.mxu1 %vm367_vm1, %v1270_v29 }
 0x2da   : > { %3199 = vmatprep.mubr.msk.f32.mxu1 %vm367_vm1, %v1271_v30 }
 0x2dd   : > { %3200 = vmatmul.mubr.msk.f32.gmra.mxu1 %vm367_vm1, %v1271_v30 }
 0x2de   : > { %3201 = vmatprep.mubr.msk.f32.mxu1 %vm367_vm1, %v1272_v31 }
 0x2e1   : > { %3202 = vmatmul.mubr.msk.f32.gmra.mxu1 %vm367_vm1, %v1272_v31 }
 0x2e2   : > { %3203 = vmatprep.mubr.msk.f32.mxu1 %vm367_vm1, %v1273_v32 }
 0x2e5   : > { %3204 = vmatmul.mubr.msk.f32.gmra.mxu1 %vm367_vm1, %v1273_v32 }
 0x2e6   : > { %3205 = vmatprep.mubr.msk.f32.mxu1 %vm367_vm1, %v1274_v33 }
 0x2e9   : > { %3206 = vmatmul.mubr.msk.f32.gmra.mxu1 %vm367_vm1, %v1274_v33 }
 0x2ea   : > { %3207 = vmatprep.mubr.msk.f32.mxu1 %vm367_vm1, %v1275_v34 }
 0x2ed   : > { %3208 = vmatmul.mubr.msk.f32.gmra.mxu1 %vm367_vm1, %v1275_v34 }
 0x2ee   : > { %3209 = vmatprep.mubr.msk.f32.mxu1 %vm367_vm1, %v1276_v35 }
 0x2f1   : > { %3210 = vmatmul.mubr.msk.f32.gmra.mxu1 %vm367_vm1, %v1276_v35 }
 0x2f2   : > { %3211 = vmatprep.mubr.msk.f32.mxu1 %vm367_vm1, %v1277_v36 }
 0x2f5   : > { %3212 = vmatmul.mubr.msk.f32.gmra.mxu1 %vm367_vm1, %v1277_v36 }
 0x2f6   : > { %3213 = vmatprep.mubr.msk.f32.mxu1 %vm367_vm1, %v1278_v37 }
 0x2f9   : > { %3214 = vmatmul.mubr.msk.f32.gmra.mxu1 %vm367_vm1, %v1278_v37 }
 0x2fa   : > { %3215 = vmatprep.mubr.msk.f32.mxu1 %vm367_vm1, %v1279_v38 }
 0x2fd   : > { %3216 = vmatmul.mubr.msk.f32.gmra.mxu1 %vm367_vm1, %v1279_v38 }
 0x2fe   : > { %3217 = vmatprep.mubr.msk.f32.mxu1 %vm367_vm1, %v1280_v39 }
 0x301   : > { %3218 = vmatmul.mubr.msk.f32.gmra.mxu1 %vm367_vm1, %v1280_v39 }
 0x345   : > { %v4494_v40 = vpop.f32.mrf.mxu1 }
 0x347   : > { %v4496_v41 = vpop.f32.mrf.mxu1 }
 0x348   : > { %v1795_v42 = vmax.f32 %v4494_v40, %v4496_v41 }
 0x349   : > { %v4500_v43 = vpop.f32.mrf.mxu1 }
 0x34a   : > { %1796 = vmax.xlane.f32.xlu1 %v1795_v42 }
 0x34b   : > { %v4502_v44 = vpop.f32.mrf.mxu1 }
 0x34c   : > { %v1798_v46 = vmax.f32 %v4500_v43, %v4502_v44 }
 0x34d   : > { %v4506_v47 = vpop.f32.mrf.mxu1 }
 0x34e   : > { %1799 = vmax.xlane.f32.xlu1 %v1798_v46 }
 0x34f   : > { %v4508_v48 = vpop.f32.mrf.mxu1 }
 0x350   : > { %v1801_v49 = vmax.f32 %v4506_v47, %v4508_v48 }
 0x351   : > { %v4512_v50 = vpop.f32.mrf.mxu1 }
 0x352   : > { %1802 = vmax.xlane.f32.xlu1 %v1801_v49 }
 0x353   : > { %v4514_v51 = vpop.f32.mrf.mxu1 }
 0x354   : > { %v1804_v52 = vmax.f32 %v4512_v50, %v4514_v51 }
 0x355   : > { %v4518_v53 = vpop.f32.mrf.mxu1 }
 0x356   : > { %1805 = vmax.xlane.f32.xlu1 %v1804_v52 }
 0x357   : > { %v4520_v54 = vpop.f32.mrf.mxu1 }
 0x358   : > { %v1807_v55 = vmax.f32 %v4518_v53, %v4520_v54 }
 0x359   : > { %v4524_v56 = vpop.f32.mrf.mxu1 }
 0x35a   : > { %1808 = vmax.xlane.f32.xlu1 %v1807_v55 }
 0x35b   : > { %v4526_v57 = vpop.f32.mrf.mxu1 }
 0x35c   : > { %v1810_v58 = vmax.f32 %v4524_v56, %v4526_v57 }
 0x35d   : > { %v4530_v59 = vpop.f32.mrf.mxu1 }
 0x35e   : > { %1811 = vmax.xlane.f32.xlu1 %v1810_v58 }
 0x35f   : > { %v4532_v61 = vpop.f32.mrf.mxu1 }
 0x360   : > { %v1813_v62 = vmax.f32 %v4530_v59, %v4532_v61 }
 0x361   : > { %v4536_v63 = vpop.f32.mrf.mxu1 }
 0x362   : > { %1814 = vmax.xlane.f32.xlu1 %v1813_v62 }
 0x363   : > { %v4538_v0 = vpop.f32.mrf.mxu1 }
 0x364   : > { %v1816_v1 = vmax.f32 %v4536_v63, %v4538_v0 }
 0x365   : > { %v4542_v2 = vpop.f32.mrf.mxu1 }
 0x366   : > { %1817 = vmax.xlane.f32.xlu1 %v1816_v1 }
 0x367   : > { %v4544_v3 = vpop.f32.mrf.mxu1 }
 0x368   : > { %v1819_v4 = vmax.f32 %v4542_v2, %v4544_v3 }
 0x369   : > { %v4548_v5 = vpop.f32.mrf.mxu1 }
 0x36a   : > { %1820 = vmax.xlane.f32.xlu1 %v1819_v4 }
 0x36b   : > { %v4550_v6 = vpop.f32.mrf.mxu1 }
 0x36c   : > { %v1822_v7 = vmax.f32 %v4548_v5, %v4550_v6 }
 0x36d   : > { %v4554_v8 = vpop.f32.mrf.mxu1 }
 0x36e   : > { %1823 = vmax.xlane.f32.xlu1 %v1822_v7 }
 0x36f   : > { %v4556_v9 = vpop.f32.mrf.mxu1 }
 0x370   : > { %v1825_v10 = vmax.f32 %v4554_v8, %v4556_v9 }
 0x371   : > { %v4560_v11 = vpop.f32.mrf.mxu1 }
 0x372   : > { %1826 = vmax.xlane.f32.xlu1 %v1825_v10 }
 0x373   : > { %v4562_v12 = vpop.f32.mrf.mxu1 }
 0x374   : > { %v1828_v13 = vmax.f32 %v4560_v11, %v4562_v12 }
 0x375   : > { %v4566_v60 = vpop.f32.mrf.mxu1 }
 0x376   : > { %1829 = vmax.xlane.f32.xlu1 %v1828_v13 }
 0x377   : > { %v4568_v45 = vpop.f32.mrf.mxu1 }
 0x378   : > { %v1831_v14 = vmax.f32 %v4566_v60, %v4568_v45 }
 0x379   : > { %v4572_v15 = vpop.f32.mrf.mxu1 }
 0x37a   : > { %1832 = vmax.xlane.f32.xlu1 %v1831_v14 }
 0x37b   : > { %v4574_v16 = vpop.f32.mrf.mxu1 }
 0x37c   : > { %v1834_v17 = vmax.f32 %v4572_v15, %v4574_v16 }
 0x37d   : > { %v4578_v18 = vpop.f32.mrf.mxu1 }
 0x37e   : > { %1835 = vmax.xlane.f32.xlu1 %v1834_v17 }
 0x37f   : > { %v4580_v19 = vpop.f32.mrf.mxu1 }
 0x380   : > { %v1837_v20 = vmax.f32 %v4578_v18, %v4580_v19 }
 0x381   : > { %v4584_v21 = vpop.f32.mrf.mxu1 }
 0x382   : > { %1838 = vmax.xlane.f32.xlu1 %v1837_v20 }
 0x383   : > { %v4586_v22 = vpop.f32.mrf.mxu1 }
 0x384   : > { %v1840_v23 = vmax.f32 %v4584_v21, %v4586_v22 }
 0x385   : > { %v4590_v24 = vpop.f32.mrf.mxu1 }
 0x386   : > { %1841 = vmax.xlane.f32.xlu1 %v1840_v23 }
 0x387   : > { %v4592_v25 = vpop.f32.mrf.mxu1 }
 0x388   : > { %v1843_v26 = vmax.f32 %v4590_v24, %v4592_v25 }
 0x389   : > { %v4596_v27 = vpop.f32.mrf.mxu1 }
 0x38a   : > { %1844 = vmax.xlane.f32.xlu1 %v1843_v26 }
 0x38b   : > { %v4598_v28 = vpop.f32.mrf.mxu1 }
 0x38c   : > { %v1846_v29 = vmax.f32 %v4596_v27, %v4598_v28 }
 0x38d   : > { %v4602_v30 = vpop.f32.mrf.mxu1 }
 0x38e   : > { %1847 = vmax.xlane.f32.xlu0 %v1846_v29 }
 0x38f   : > { %v4604_v31 = vpop.f32.mrf.mxu1 }
 0x390   : > { %v1849_v32 = vmax.f32 %v4602_v30, %v4604_v31 }
 0x391   : > { %v4608_v33 = vpop.f32.mrf.mxu1 }
 0x392   : > { %1850 = vmax.xlane.f32.xlu1 %v1849_v32 }
 0x393   : > { %v4610_v34 = vpop.f32.mrf.mxu1 }
 0x394   : > { %v1852_v35 = vmax.f32 %v4608_v33, %v4610_v34 }
 0x395   : > { %v4614_v36 = vpop.f32.mrf.mxu1 }
 0x396   : > { %1853 = vmax.xlane.f32.xlu1 %v1852_v35 }
 0x397   : > { %v4616_v37 = vpop.f32.mrf.mxu1 }
 0x398   : > { %v1855_v38 = vmax.f32 %v4614_v36, %v4616_v37 }
 0x399   : > { %v4620_v39 = vpop.f32.mrf.mxu1 }
 0x39a   : > { %1856 = vmax.xlane.f32.xlu1 %v1855_v38 }
 0x39b   : > { %v4622_v42 = vpop.f32.mrf.mxu1 }
 0x39c   : > { %v1858_v46 = vmax.f32 %v4620_v39, %v4622_v42 }
 0x39d   : > { %v4626_v49 = vpop.f32.mrf.mxu1 }
 0x39e   : > { %1859 = vmax.xlane.f32.xlu1 %v1858_v46 }
 0x39f   : > { %v4628_v52 = vpop.f32.mrf.mxu1 }
 0x3a0   : > { %v1861_v55 = vmax.f32 %v4626_v49, %v4628_v52 }
 0x3a1   : > { %v4632_v58 = vpop.f32.mrf.mxu1 }
 0x3a2   : > { %1862 = vmax.xlane.f32.xlu1 %v1861_v55 }
 0x3a3   : > { %v4634_v62 = vpop.f32.mrf.mxu1 }
 0x3a4   : > { %v1864_v1 = vmax.f32 %v4632_v58, %v4634_v62 }
 0x3a5   : > { %v4638_v4 = vpop.f32.mrf.mxu1 }
 0x3a6   : > { %1865 = vmax.xlane.f32.xlu1 %v1864_v1 }
 0x3a7   : > { %v4640_v7 = vpop.f32.mrf.mxu1 }
 0x3a8   : > { %v1867_v10 = vmax.f32 %v4638_v4, %v4640_v7 }
 0x3a9   : > { %v4644_v13 = vpop.f32.mrf.mxu1 }
 0x3aa   : > { %5032 = vst [vmem:[#allocation18_spill] sm:$0xff] %v4644_v13  ;;  %1868 = vmax.xlane.f32.xlu1 %v1867_v10 }
 0x3ab   : > { %v4646_v14 = vpop.f32.mrf.mxu1 }
 0x3ac   : > { %5033 = vst [vmem:[#allocation19_spill] sm:$0xff] %v4646_v14  ;;  %v1870_v17 = vmax.f32 %v4644_v13, %v4646_v14 }
 0x3ad   : > { %v4650_v20 = vpop.f32.mrf.mxu1 }
 0x3ae   : > { %5034 = vst [vmem:[#allocation20_spill] sm:$0xff] %v4650_v20  ;;  %1871 = vmax.xlane.f32.xlu1 %v1870_v17 }
 0x3af   : > { %v4652_v23 = vpop.f32.mrf.mxu1 }
 0x3b0   : > { %5035 = vst [vmem:[#allocation21_spill] sm:$0xff] %v4652_v23  ;;  %v1873_v26 = vmax.f32 %v4650_v20, %v4652_v23 }
 0x3b1   : > { %v4656_v29 = vpop.f32.mrf.mxu1 }
 0x3b2   : > { %5036 = vst [vmem:[#allocation22_spill] sm:$0xff] %v4656_v29  ;;  %1874 = vmax.xlane.f32.xlu1 %v1873_v26 }
 0x3b3   : > { %v4658_v32 = vpop.f32.mrf.mxu1 }
 0x3b4   : > { %5037 = vst [vmem:[#allocation23_spill] sm:$0xff] %v4658_v32  ;;  %v1876_v35 = vmax.f32 %v4656_v29, %v4658_v32 }
 0x3b5   : > { %v4662_v38 = vpop.f32.mrf.mxu1 }
 0x3b6   : > { %5038 = vst [vmem:[#allocation24_spill] sm:$0xff] %v4662_v38  ;;  %1877 = vmax.xlane.f32.xlu1 %v1876_v35 }
 0x3b7   : > { %v4664_v46 = vpop.f32.mrf.mxu1 }
 0x3b8   : > { %5039 = vst [vmem:[#allocation25_spill] sm:$0xff] %v4664_v46  ;;  %v1879_v55 = vmax.f32 %v4662_v38, %v4664_v46 }
 0x3b9   : > { %v4668_v1 = vpop.f32.mrf.mxu1 }
 0x3ba   : > { %5040 = vst [vmem:[#allocation26_spill] sm:$0xff] %v4668_v1  ;;  %1880 = vmax.xlane.f32.xlu1 %v1879_v55 }
 0x3bb   : > { %v4670_v10 = vpop.f32.mrf.mxu1 }
 0x3bc   : > { %5041 = vst [vmem:[#allocation27_spill] sm:$0xff] %v4670_v10  ;;  %v1882_v17 = vmax.f32 %v4668_v1, %v4670_v10 }
 0x3bd   : > { %v4674_v26 = vpop.f32.mrf.mxu1 }
 0x3be   : > { %5042 = vst [vmem:[#allocation28_spill] sm:$0xff] %v4674_v26  ;;  %1883 = vmax.xlane.f32.xlu1 %v1882_v17 }
 0x3bf   : > { %v4676_v32 = vpop.f32.mrf.mxu1 }
 0x3c0   : > { %5043 = vst [vmem:[#allocation29_spill] sm:$0xff] %v4676_v32  ;;  %v1885_v35 = vmax.f32 %v4674_v26, %v4676_v32 }
 0x3c1   : > { %v4680_v29 = vpop.f32.mrf.mxu1 }
 0x3c2   : > { %1886 = vmax.xlane.f32.xlu1 %v1885_v35 }
 0x3c3   : > { %v4682_v46 = vpop.f32.mrf.mxu1 }
 0x3c4   : > { %5044 = vst [vmem:[#allocation30_spill] sm:$0xff] %v4682_v46  ;;  %v1888_v55 = vmax.f32 %v4680_v29, %v4682_v46 }
 0x3c6   : > { %1889 = vmax.xlane.f32.xlu1 %v1888_v55 }
 0x3d3   : > { %v1797_v38 = vpop.xlane.xlu1 %1796 }
 0x3d4   : > { %v1891_v10 = vsub.f32 %v4494_v40, %v1797_v38  ;;  %v1892_v1 = vsub.f32 %v4496_v41, %v1797_v38 }
 0x3d6   : > { %v1955_v17 = vmul.f32 1.442695, %v1891_v10  ;;  %v1957_v23 = vmul.f32 1.442695, %v1892_v1 }
 0x3d7   : > { %v1800_v20 = vpop.xlane.xlu1 %1799 }
 0x3d8   : > { %3500 = vpow2.f32 %v1955_v17  ;;  %v1893_v32 = vsub.f32 %v4500_v43, %v1800_v20  ;;  %v1894_v26 = vsub.f32 %v4502_v44, %v1800_v20 }
 0x3d9   : > { %3502 = vpow2.f32 %v1957_v23 }
 0x3da   : > { %v1959_v35 = vmul.f32 1.442695, %v1893_v32  ;;  %v1961_v14 = vmul.f32 1.442695, %v1894_v26 }
 0x3db   : > { %v1803_v13 = vpop.xlane.xlu1 %1802 }
 0x3dc   : > { %3504 = vpow2.f32 %v1959_v35  ;;  %v1895_v55 = vsub.f32 %v4506_v47, %v1803_v13  ;;  %v1896_v46 = vsub.f32 %v4508_v48, %v1803_v13 }
 0x3dd   : > { %3506 = vpow2.f32 %v1961_v14 }
 0x3de   : > { %v1963_v40 = vmul.f32 1.442695, %v1895_v55  ;;  %v1965_v41 = vmul.f32 1.442695, %v1896_v46 }
 0x3df   : > { %v1806_v38 = vpop.xlane.xlu1 %1805 }
 0x3e0   : > { %3508 = vpow2.f32 %v1963_v40  ;;  %v1897_v1 = vsub.f32 %v4512_v50, %v1806_v38  ;;  %v1898_v43 = vsub.f32 %v4514_v51, %v1806_v38 }
 0x3e1   : > { %3510 = vpow2.f32 %v1965_v41 }
 0x3e2   : > { %v1967_v44 = vmul.f32 1.442695, %v1897_v1  ;;  %v1969_v20 = vmul.f32 1.442695, %v1898_v43 }
 0x3e3   : > { %v1809_v23 = vpop.xlane.xlu1 %1808 }
 0x3e4   : > { %3512 = vpow2.f32 %v1967_v44  ;;  %v1899_v32 = vsub.f32 %v4518_v53, %v1809_v23  ;;  %v1900_v47 = vsub.f32 %v4520_v54, %v1809_v23 }
 0x3e5   : > { %v3501_v10 = vpop.eup %3500  ;;  %3514 = vpow2.f32 %v1969_v20 }
 0x3e6   : > { %v3503_v48 = vpop.eup %3502  ;;  %v1971_v13 = vmul.f32 1.442695, %v1899_v32  ;;  %v1973_v14 = vmul.f32 1.442695, %v1900_v47 }
 0x3e7   : > { %2243 = vmatprep.mubr.f32.mxu0 %v3503_v48  ;;  %v1812_v46 = vpop.xlane.xlu1 %1811  ;;  %v4696_v26 = vadd.f32 %v3503_v48, %v3501_v10 }
 0x3e8   : > { %3516 = vpow2.f32 %v1971_v13  ;;  %v1901_v50 = vsub.f32 %v4524_v56, %v1812_v46  ;;  %v1902_v51 = vsub.f32 %v4526_v57, %v1812_v46  ;;  %2244 = vmatmul.mubr.f32.vlgmr.msra.gmra.mxu0 %v3501_v10 }
 0x3e9   : > { %v3505_v17 = vpop.eup %3504  ;;  %3518 = vpow2.f32 %v1973_v14 }
 0x3ea   : > { %v3507_v53 = vpop.eup %3506  ;;  %v1975_v35 = vmul.f32 1.442695, %v1901_v50  ;;  %v1977_v54 = vmul.f32 1.442695, %v1902_v51 }
 0x3eb   : > { %2248 = vmatprep.mubr.f32.mxu0 %v3507_v53  ;;  %v1815_v55 = vpop.xlane.xlu1 %1814  ;;  %v4700_v40 = vadd.f32 %v3507_v53, %v3505_v17 }
 0x3ec   : > { %3520 = vpow2.f32 %v1975_v35  ;;  %v1903_v41 = vsub.f32 %v4530_v59, %v1815_v55  ;;  %v1904_v38 = vsub.f32 %v4532_v61, %v1815_v55  ;;  %2249 = vmatmul.mubr.f32.gmra.mxu0 %v3505_v17 }
 0x3ed   : > { %v3509_v1 = vpop.eup %3508  ;;  %3522 = vpow2.f32 %v1977_v54 }
 0x3ee   : > { %v3511_v56 = vpop.eup %3510  ;;  %v1979_v57 = vmul.f32 1.442695, %v1903_v41  ;;  %v1981_v43 = vmul.f32 1.442695, %v1904_v38 }
 0x3ef   : > { %2253 = vmatprep.mubr.f32.mxu0 %v3511_v56  ;;  %v1818_v44 = vpop.xlane.xlu1 %1817  ;;  %v4704_v20 = vadd.f32 %v3511_v56, %v3509_v1 }
 0x3f0   : > { %3524 = vpow2.f32 %v1979_v57  ;;  %v1905_v23 = vsub.f32 %v4536_v63, %v1818_v44  ;;  %v1906_v32 = vsub.f32 %v4538_v0, %v1818_v44  ;;  %2254 = vmatmul.mubr.f32.gmra.mxu0 %v3509_v1 }
 0x3f1   : > { %v3513_v47 = vpop.eup %3512  ;;  %3526 = vpow2.f32 %v1981_v43 }
 0x3f2   : > { %v3515_v59 = vpop.eup %3514  ;;  %v1983_v61 = vmul.f32 1.442695, %v1905_v23  ;;  %v1985_v10 = vmul.f32 1.442695, %v1906_v32 }
 0x3f3   : > { %2258 = vmatprep.mubr.f32.mxu0 %v3515_v59  ;;  %v1821_v48 = vpop.xlane.xlu1 %1820  ;;  %v4708_v13 = vadd.f32 %v3515_v59, %v3513_v47 }
 0x3f4   : > { %3528 = vpow2.f32 %v1983_v61  ;;  %v1907_v14 = vsub.f32 %v4542_v2, %v1821_v48  ;;  %v1908_v46 = vsub.f32 %v4544_v3, %v1821_v48  ;;  %2259 = vmatmul.mubr.f32.gmra.mxu0 %v3513_v47 }
 0x3f5   : > { %v3517_v50 = vpop.eup %3516  ;;  %3530 = vpow2.f32 %v1985_v10 }
 0x3f6   : > { %v3519_v63 = vpop.eup %3518  ;;  %v1987_v0 = vmul.f32 1.442695, %v1907_v14  ;;  %v1989_v51 = vmul.f32 1.442695, %v1908_v46 }
 0x3f7   : > { %2263 = vmatprep.mubr.f32.mxu0 %v3519_v63  ;;  %v1824_v17 = vpop.xlane.xlu1 %1823  ;;  %v4712_v53 = vadd.f32 %v3519_v63, %v3517_v50 }
 0x3f8   : > { %3532 = vpow2.f32 %v1987_v0  ;;  %v1909_v35 = vsub.f32 %v4548_v5, %v1824_v17  ;;  %v1910_v54 = vsub.f32 %v4550_v6, %v1824_v17  ;;  %2264 = vmatmul.mubr.f32.gmra.mxu0 %v3517_v50 }
 0x3f9   : > { %v3521_v55 = vpop.eup %3520  ;;  %3534 = vpow2.f32 %v1989_v51 }
 0x3fa   : > { %v3523_v2 = vpop.eup %3522  ;;  %v1991_v3 = vmul.f32 1.442695, %v1909_v35  ;;  %v1993_v41 = vmul.f32 1.442695, %v1910_v54 }
 0x3fb   : > { %2268 = vmatprep.mubr.f32.mxu0 %v3523_v2  ;;  %v1827_v38 = vpop.xlane.xlu1 %1826  ;;  %v4716_v1 = vadd.f32 %v3523_v2, %v3521_v55 }
 0x3fc   : > { %3536 = vpow2.f32 %v1991_v3  ;;  %v1911_v56 = vsub.f32 %v4554_v8, %v1827_v38  ;;  %v1912_v57 = vsub.f32 %v4556_v9, %v1827_v38  ;;  %2269 = vmatmul.mubr.f32.gmra.mxu0 %v3521_v55 }
 0x3fd   : > { %v3525_v43 = vpop.eup %3524  ;;  %3538 = vpow2.f32 %v1993_v41 }
 0x3fe   : > { %v3527_v5 = vpop.eup %3526  ;;  %v1995_v6 = vmul.f32 1.442695, %v1911_v56  ;;  %v1997_v44 = vmul.f32 1.442695, %v1912_v57 }
 0x3ff   : > { %2273 = vmatprep.mubr.f32.mxu0 %v3527_v5  ;;  %v1830_v23 = vpop.xlane.xlu1 %1829  ;;  %v4720_v32 = vadd.f32 %v3527_v5, %v3525_v43 }
 0x400   : > { %3540 = vpow2.f32 %v1995_v6  ;;  %v1913_v47 = vsub.f32 %v4560_v11, %v1830_v23  ;;  %v1914_v59 = vsub.f32 %v4562_v12, %v1830_v23  ;;  %2274 = vmatmul.mubr.f32.gmra.mxu0 %v3525_v43 }
 0x401   : > { %v3529_v61 = vpop.eup %3528  ;;  %3542 = vpow2.f32 %v1997_v44 }
 0x402   : > { %v3531_v8 = vpop.eup %3530  ;;  %v1999_v9 = vmul.f32 1.442695, %v1913_v47  ;;  %v2001_v10 = vmul.f32 1.442695, %v1914_v59 }
 0x403   : > { %2278 = vmatprep.mubr.f32.mxu0 %v3531_v8  ;;  %v1833_v48 = vpop.xlane.xlu1 %1832  ;;  %v4724_v14 = vadd.f32 %v3531_v8, %v3529_v61 }
 0x404   : > { %3544 = vpow2.f32 %v1999_v9  ;;  %v1915_v46 = vsub.f32 %v4566_v60, %v1833_v48  ;;  %v1916_v50 = vsub.f32 %v4568_v45, %v1833_v48  ;;  %2279 = vmatmul.mubr.f32.gmra.mxu0 %v3529_v61 }
 0x405   : > { %v3533_v63 = vpop.eup %3532  ;;  %3546 = vpow2.f32 %v2001_v10 }
 0x406   : > { %v3535_v11 = vpop.eup %3534  ;;  %v2003_v12 = vmul.f32 1.442695, %v1915_v46  ;;  %v2005_v0 = vmul.f32 1.442695, %v1916_v50 }
 0x407   : > { %2283 = vmatprep.mubr.f32.mxu0 %v3535_v11  ;;  %v1836_v51 = vpop.xlane.xlu1 %1835  ;;  %v4728_v17 = vadd.f32 %v3535_v11, %v3533_v63 }
 0x408   : > { %3548 = vpow2.f32 %v2003_v12  ;;  %v1917_v35 = vsub.f32 %v4572_v15, %v1836_v51  ;;  %v1918_v54 = vsub.f32 %v4574_v16, %v1836_v51  ;;  %2284 = vmatmul.mubr.f32.gmra.mxu0 %v3533_v63 }
 0x409   : > { %v3537_v55 = vpop.eup %3536  ;;  %3550 = vpow2.f32 %v2005_v0 }
 0x40a   : > { %v3539_v60 = vpop.eup %3538  ;;  %v2007_v45 = vmul.f32 1.442695, %v1917_v35  ;;  %v2009_v2 = vmul.f32 1.442695, %v1918_v54 }
 0x40b   : > { %2288 = vmatprep.mubr.f32.mxu0 %v3539_v60  ;;  %v1839_v3 = vpop.xlane.xlu1 %1838  ;;  %v4732_v41 = vadd.f32 %v3539_v60, %v3537_v55 }
 0x40c   : > { %3552 = vpow2.f32 %v2007_v45  ;;  %v1919_v38 = vsub.f32 %v4578_v18, %v1839_v3  ;;  %v1920_v56 = vsub.f32 %v4580_v19, %v1839_v3  ;;  %2289 = vmatmul.mubr.f32.gmra.mxu0 %v3537_v55 }
 0x40d   : > { %v3541_v57 = vpop.eup %3540  ;;  %3554 = vpow2.f32 %v2009_v2 }
 0x40e   : > { %v3543_v15 = vpop.eup %3542  ;;  %v2011_v16 = vmul.f32 1.442695, %v1919_v38  ;;  %v2013_v43 = vmul.f32 1.442695, %v1920_v56 }
 0x40f   : > { %2293 = vmatprep.mubr.f32.mxu0 %v3543_v15  ;;  %v1842_v5 = vpop.xlane.xlu1 %1841  ;;  %v4736_v6 = vadd.f32 %v3543_v15, %v3541_v57 }
 0x410   : > { %3556 = vpow2.f32 %v2011_v16  ;;  %v1921_v44 = vsub.f32 %v4584_v21, %v1842_v5  ;;  %v1922_v23 = vsub.f32 %v4586_v22, %v1842_v5  ;;  %2294 = vmatmul.mubr.f32.gmra.mxu0 %v3541_v57 }
 0x411   : > { %v3545_v47 = vpop.eup %3544  ;;  %3558 = vpow2.f32 %v2013_v43 }
 0x412   : > { %v3547_v18 = vpop.eup %3546  ;;  %v2015_v19 = vmul.f32 1.442695, %v1921_v44  ;;  %v2017_v59 = vmul.f32 1.442695, %v1922_v23 }
 0x413   : > { %2298 = vmatprep.mubr.f32.mxu0 %v3547_v18  ;;  %v1845_v61 = vpop.xlane.xlu1 %1844  ;;  %v4740_v8 = vadd.f32 %v3547_v18, %v3545_v47 }
 0x414   : > { %3560 = vpow2.f32 %v2015_v19  ;;  %2299 = vmatmul.mubr.f32.gmra.mxu0 %v3545_v47  ;;  %v1923_v9 = vsub.f32 %v4590_v24, %v1845_v61  ;;  %v1924_v10 = vsub.f32 %v4592_v25, %v1845_v61 }
 0x415   : > { %v3549_v48 = vpop.eup %3548  ;;  %3562 = vpow2.f32 %v2017_v59 }
 0x416   : > { %v3551_v21 = vpop.eup %3550  ;;  %v2019_v22 = vmul.f32 1.442695, %v1923_v9  ;;  %v2021_v46 = vmul.f32 1.442695, %v1924_v10 }
 0x417   : > { %2303 = vmatprep.mubr.f32.mxu0 %v3551_v21  ;;  %v1848_v50 = vpop.xlane.xlu0 %1847  ;;  %v4744_v63 = vadd.f32 %v3551_v21, %v3549_v48 }
 0x418   : > { %3564 = vpow2.f32 %v2019_v22  ;;  %2304 = vmatmul.mubr.f32.gmra.mxu0 %v3549_v48  ;;  %v1925_v11 = vsub.f32 %v4596_v27, %v1848_v50  ;;  %v1926_v12 = vsub.f32 %v4598_v28, %v1848_v50 }
 0x419   : > { %v3553_v0 = vpop.eup %3552  ;;  %3566 = vpow2.f32 %v2021_v46 }
 0x41a   : > { %v3555_v24 = vpop.eup %3554  ;;  %v2023_v51 = vmul.f32 1.442695, %v1925_v11  ;;  %v2025_v25 = vmul.f32 1.442695, %v1926_v12 }
 0x41b   : > { %2308 = vmatprep.mubr.f32.mxu0 %v3555_v24  ;;  %v1851_v35 = vpop.xlane.xlu1 %1850  ;;  %v2122_v54 = vadd.f32 %v3555_v24, %v3553_v0 }
 0x41c   : > { %3568 = vpow2.f32 %v2023_v51  ;;  %2309 = vmatmul.mubr.f32.gmra.mxu0 %v3553_v0  ;;  %v1927_v55 = vsub.f32 %v4602_v30, %v1851_v35  ;;  %v1928_v60 = vsub.f32 %v4604_v31, %v1851_v35 }
 0x41d   : > { %v3557_v45 = vpop.eup %3556  ;;  %3570 = vpow2.f32 %v2025_v25  ;;  %2123 = vadd.xlane.f32.xlu1 %v2122_v54 }
 0x41e   : > { %v3559_v27 = vpop.eup %3558  ;;  %v2027_v2 = vmul.f32 1.442695, %v1927_v55  ;;  %v2029_v28 = vmul.f32 1.442695, %v1928_v60 }
 0x41f   : > { %2313 = vmatprep.mubr.f32.mxu0 %v3559_v27  ;;  %v1854_v3 = vpop.xlane.xlu1 %1853  ;;  %v2125_v38 = vadd.f32 %v3559_v27, %v3557_v45 }
 0x420   : > { %3572 = vpow2.f32 %v2027_v2  ;;  %2314 = vmatmul.mubr.f32.gmra.mxu0 %v3557_v45  ;;  %v1929_v56 = vsub.f32 %v4608_v33, %v1854_v3  ;;  %v1930_v57 = vsub.f32 %v4610_v34, %v1854_v3  ;;  %v5045_v3 = vld [vmem:[#allocation18_spill] sm:$0xff] }
 0x421   : > { %v3561_v15 = vpop.eup %3560  ;;  %3574 = vpow2.f32 %v2029_v28  ;;  %2126 = vadd.xlane.f32.xlu1 %v2125_v38 }
 0x422   : > { %v3563_v30 = vpop.eup %3562  ;;  %v2031_v31 = vmul.f32 1.442695, %v1929_v56  ;;  %v2033_v16 = vmul.f32 1.442695, %v1930_v57  ;;  %v5046_v56 = vld [vmem:[#allocation19_spill] sm:$0xff] }
 0x423   : > { %2318 = vmatprep.mubr.f32.mxu0 %v3563_v30  ;;  %v1857_v43 = vpop.xlane.xlu1 %1856  ;;  %v2128_v5 = vadd.f32 %v3563_v30, %v3561_v15 }
 0x424   : > { %3576 = vpow2.f32 %v2031_v31  ;;  %2319 = vmatmul.mubr.f32.gmra.mxu0 %v3561_v15  ;;  %v1931_v44 = vsub.f32 %v4614_v36, %v1857_v43  ;;  %v1932_v23 = vsub.f32 %v4616_v37, %v1857_v43 }
 0x425   : > { %v3565_v47 = vpop.eup %3564  ;;  %3578 = vpow2.f32 %v2033_v16  ;;  %2129 = vadd.xlane.f32.xlu1 %v2128_v5  ;;  %v5047_v16 = vld [vmem:[#allocation20_spill] sm:$0xff]  ;;  %v5048_v5 = vld [vmem:[#allocation21_spill] sm:$0xff] }
 0x426   : > { %v3567_v33 = vpop.eup %3566  ;;  %v2035_v34 = vmul.f32 1.442695, %v1931_v44  ;;  %v2037_v18 = vmul.f32 1.442695, %v1932_v23 }
 0x427   : > { %2323 = vmatprep.mubr.f32.mxu0 %v3567_v33  ;;  %v1860_v19 = vpop.xlane.xlu1 %1859  ;;  %v4754_v59 = vadd.f32 %v3567_v33, %v3565_v47 }
 0x428   : > { %3580 = vpow2.f32 %v2035_v34  ;;  %2324 = vmatmul.mubr.f32.gmra.mxu0 %v3565_v47  ;;  %v1933_v61 = vsub.f32 %v4620_v39, %v1860_v19  ;;  %v1934_v9 = vsub.f32 %v4622_v42, %v1860_v19  ;;  %v5049_v19 = vld [vmem:[#allocation22_spill] sm:$0xff] }
 0x429   : > { %v3569_v10 = vpop.eup %3568  ;;  %3582 = vpow2.f32 %v2037_v18 }
 0x42a   : > { %v3571_v36 = vpop.eup %3570  ;;  %v2039_v37 = vmul.f32 1.442695, %v1933_v61  ;;  %v2041_v48 = vmul.f32 1.442695, %v1934_v9  ;;  %v5050_v9 = vld [vmem:[#allocation23_spill] sm:$0xff] }
 0x42b   : > { %2328 = vmatprep.mubr.f32.mxu0 %v3571_v36  ;;  %v1863_v21 = vpop.xlane.xlu1 %1862  ;;  %v4758_v22 = vadd.f32 %v3571_v36, %v3569_v10 }
 0x42c   : > { %3584 = vpow2.f32 %v2039_v37  ;;  %2329 = vmatmul.mubr.f32.gmra.mxu0 %v3569_v10  ;;  %v1935_v46 = vsub.f32 %v4626_v49, %v1863_v21  ;;  %v1936_v50 = vsub.f32 %v4628_v52, %v1863_v21 }
 0x42d   : > { %v3573_v11 = vpop.eup %3572  ;;  %3586 = vpow2.f32 %v2041_v48 }
 0x42e   : > { %v3575_v39 = vpop.eup %3574  ;;  %v2043_v12 = vmul.f32 1.442695, %v1935_v46  ;;  %v2045_v42 = vmul.f32 1.442695, %v1936_v50  ;;  %v5051_v50 = vld [vmem:[#allocation24_spill] sm:$0xff] }
 0x42f   : > { %2333 = vmatprep.mubr.f32.mxu0 %v3575_v39  ;;  %v1866_v0 = vpop.xlane.xlu1 %1865  ;;  %v4762_v24 = vadd.f32 %v3575_v39, %v3573_v11  ;;  %v5052_v39 = vld [vmem:[#allocation25_spill] sm:$0xff] }
 0x430   : > { %3588 = vpow2.f32 %v2043_v12  ;;  %2334 = vmatmul.mubr.f32.gmra.mxu0 %v3573_v11  ;;  %v1937_v51 = vsub.f32 %v4632_v58, %v1866_v0  ;;  %v1938_v25 = vsub.f32 %v4634_v62, %v1866_v0 }
 0x431   : > { %v4766_v35 = vpop.eup %3576  ;;  %3590 = vpow2.f32 %v2045_v42 }
 0x432   : > { %v4768_v49 = vpop.eup %3578  ;;  %v2047_v52 = vmul.f32 1.442695, %v1937_v51  ;;  %v2049_v54 = vmul.f32 1.442695, %v1938_v25 }
 0x433   : > { %2338 = vmatprep.mubr.f32.mxu0 %v4768_v49  ;;  %v1869_v55 = vpop.xlane.xlu1 %1868 }
 0x434   : > { %3592 = vpow2.f32 %v2047_v52  ;;  %2339 = vmatmul.mubr.f32.gmra.mxu0 %v4766_v35  ;;  %v1939_v60 = vsub.f32 %v4638_v4, %v1869_v55  ;;  %v1940_v45 = vsub.f32 %v4640_v7, %v1869_v55 }
 0x435   : > { %v4774_v58 = vpop.eup %3580  ;;  %3594 = vpow2.f32 %v2049_v54  ;;  %v5053_v54 = vld [vmem:[#allocation26_spill] sm:$0xff] }
 0x436   : > { %v4776_v62 = vpop.eup %3582  ;;  %v2051_v27 = vmul.f32 1.442695, %v1939_v60  ;;  %v2053_v2 = vmul.f32 1.442695, %v1940_v45  ;;  %v5054_v60 = vld [vmem:[#allocation27_spill] sm:$0xff] }
 0x437   : > { %2343 = vmatprep.mubr.f32.mxu0 %v4776_v62  ;;  %v1872_v28 = vpop.xlane.xlu1 %1871 }
 0x438   : > { %3596 = vpow2.f32 %v2051_v27  ;;  %2344 = vmatmul.mubr.f32.gmra.mxu0 %v4774_v58  ;;  %v1941_v38 = vsub.f32 %v5045_v3, %v1872_v28  ;;  %v1942_v57 = vsub.f32 %v5046_v56, %v1872_v28 }
 0x439   : > { %v4782_v4 = vpop.eup %3584  ;;  %3598 = vpow2.f32 %v2053_v2 }
 0x43a   : > { %v4784_v7 = vpop.eup %3586  ;;  %v2055_v15 = vmul.f32 1.442695, %v1941_v38  ;;  %v2057_v30 = vmul.f32 1.442695, %v1942_v57  ;;  %v5055_v57 = vld [vmem:[#allocation28_spill] sm:$0xff] }
 0x43b   : > { %2348 = vmatprep.mubr.f32.mxu0 %v4784_v7  ;;  %v1875_v31 = vpop.xlane.xlu1 %1874 }
 0x43c   : > { %3600 = vpow2.f32 %v2055_v15  ;;  %2349 = vmatmul.mubr.f32.gmra.mxu0 %v4782_v4  ;;  %v1943_v43 = vsub.f32 %v5047_v16, %v1875_v31  ;;  %v1944_v44 = vsub.f32 %v5048_v5, %v1875_v31 }
 0x43d   : > { %v4790_v23 = vpop.eup %3588  ;;  %3602 = vpow2.f32 %v2057_v30  ;;  %v5056_v30 = vld [vmem:[#allocation29_spill] sm:$0xff] }
 0x43e   : > { %v4792_v47 = vpop.eup %3590  ;;  %v2059_v33 = vmul.f32 1.442695, %v1943_v43  ;;  %v2061_v34 = vmul.f32 1.442695, %v1944_v44 }
 0x43f   : > { %2353 = vmatprep.mubr.f32.mxu0 %v4792_v47  ;;  %v1878_v18 = vpop.xlane.xlu1 %1877 }
 0x440   : > { %3604 = vpow2.f32 %v2059_v33  ;;  %2354 = vmatmul.mubr.f32.gmra.mxu0 %v4790_v23  ;;  %v1945_v61 = vsub.f32 %v5049_v19, %v1878_v18  ;;  %v1946_v10 = vsub.f32 %v5050_v9, %v1878_v18  ;;  %v5057_v19 = vld [vmem:[#allocation30_spill] sm:$0xff] }
 0x441   : > { %v3593_v36 = vpop.eup %3592  ;;  %3606 = vpow2.f32 %v2061_v34 }
 0x442   : > { %v3595_v37 = vpop.eup %3594  ;;  %v2063_v48 = vmul.f32 1.442695, %v1945_v61  ;;  %v2065_v21 = vmul.f32 1.442695, %v1946_v10 }
 0x443   : > { %2358 = vmatprep.mubr.f32.mxu0 %v3595_v37  ;;  %v1881_v46 = vpop.xlane.xlu1 %1880 }
 0x444   : > { %3608 = vpow2.f32 %v2063_v48  ;;  %2359 = vmatmul.mubr.f32.gmra.mxu0 %v3593_v36  ;;  %v1947_v11 = vsub.f32 %v5051_v50, %v1881_v46  ;;  %v1948_v12 = vsub.f32 %v5052_v39, %v1881_v46  ;;  %v2152_v46 = vadd.f32 %v3595_v37, %v3593_v36 }
 0x445   : > { %v3597_v42 = vpop.eup %3596  ;;  %3610 = vpow2.f32 %v2065_v21 }
 0x446   : > { %v3599_v0 = vpop.eup %3598  ;;  %v2067_v51 = vmul.f32 1.442695, %v1947_v11  ;;  %v2069_v25 = vmul.f32 1.442695, %v1948_v12 }
 0x447   : > { %2363 = vmatprep.mubr.f32.mxu0 %v3599_v0  ;;  %v1884_v52 = vpop.xlane.xlu1 %1883  ;;  %v2155_v34 = vadd.f32 %v3599_v0, %v3597_v42 }
 0x448   : > { %3612 = vpow2.f32 %v2067_v51  ;;  %2364 = vmatmul.mubr.f32.gmra.mxu0 %v3597_v42  ;;  %v1949_v55 = vsub.f32 %v5053_v54, %v1884_v52  ;;  %v1950_v45 = vsub.f32 %v5054_v60, %v1884_v52  ;;  %v2146_v42 = vadd.f32 %v4784_v7, %v4782_v4 }
 0x449   : > { %v3601_v27 = vpop.eup %3600  ;;  %3614 = vpow2.f32 %v2069_v25  ;;  %v2143_v51 = vadd.f32 %v4776_v62, %v4774_v58  ;;  %v2140_v4 = vadd.f32 %v4768_v49, %v4766_v35 }
 0x44a   : > { %v3603_v2 = vpop.eup %3602  ;;  %v2071_v28 = vmul.f32 1.442695, %v1949_v55  ;;  %v2073_v3 = vmul.f32 1.442695, %v1950_v45 }
 0x44b   : > { %2368 = vmatprep.mubr.f32.mxu0 %v3603_v2  ;;  %v1887_v38 = vpop.xlane.xlu1 %1886  ;;  %v2158_v56 = vadd.f32 %v3603_v2, %v3601_v27 }
 0x44c   : > { %3616 = vpow2.f32 %v2071_v28  ;;  %2369 = vmatmul.mubr.f32.gmra.mxu0 %v3601_v27  ;;  %v1951_v15 = vsub.f32 %v5055_v57, %v1887_v38  ;;  %v1952_v31 = vsub.f32 %v5056_v30, %v1887_v38 }
 0x44d   : > { %v4804_v16 = vpop.eup %3604  ;;  %3618 = vpow2.f32 %v2073_v3  ;;  %2159 = vadd.xlane.f32.xlu0 %v2158_v56 }
 0x44e   : > { %v3607_v43 = vpop.eup %3606  ;;  %v2075_v5 = vmul.f32 1.442695, %v1951_v15  ;;  %v2077_v44 = vmul.f32 1.442695, %v1952_v31 }
 0x44f   : > { %2373 = vmatprep.mubr.f32.mxu0 %v3607_v43  ;;  %v1890_v33 = vpop.xlane.xlu1 %1889  ;;  %v2161_v35 = vadd.f32 %v3607_v43, %v4804_v16 }
 0x450   : > { %3620 = vpow2.f32 %v2075_v5  ;;  %2374 = vmatmul.mubr.f32.gmra.mxu0 %v4804_v16  ;;  %v1953_v18 = vsub.f32 %v4680_v29, %v1890_v33  ;;  %v1954_v61 = vsub.f32 %v5057_v19, %v1890_v33  ;;  %v2149_v29 = vadd.f32 %v4792_v47, %v4790_v23  ;;  %v4866_v5 = vld [vmem:[#allocation11] sm:$0xf] }
 0x451   : > { %v3609_v9 = vpop.eup %3608  ;;  %3622 = vpow2.f32 %v2077_v44  ;;  %2156 = vadd.xlane.f32.xlu0 %v2155_v34  ;;  %3251 = vmatprep.mubr.msk.f32.mxu1 %vm367_vm1, %v4866_v5 }
 0x452   : > { %v3611_v10 = vpop.eup %3610  ;;  %v2079_v48 = vmul.f32 1.442695, %v1953_v18  ;;  %v2081_v21 = vmul.f32 1.442695, %v1954_v61 }
 0x453   : > { %2378 = vmatprep.mubr.f32.mxu0 %v3611_v10  ;;  %v2164_v58 = vadd.f32 %v3611_v10, %v3609_v9 }
 0x454   : > { %3624 = vpow2.f32 %v2079_v48  ;;  %2379 = vmatmul.mubr.f32.gmra.mxu0 %v3609_v9 }
 0x455   : > { %v3613_v50 = vpop.eup %3612  ;;  %3626 = vpow2.f32 %v2081_v21  ;;  %2153 = vadd.xlane.f32.xlu0 %v2152_v46 }
 0x456   : > { %v3615_v11 = vpop.eup %3614 }
 0x457   : > { %2383 = vmatprep.mubr.f32.mxu0 %v3615_v11  ;;  %v2167_v52 = vadd.f32 %v3615_v11, %v3613_v50 }
 0x458   : > { %2384 = vmatmul.mubr.f32.gmra.mxu0 %v3613_v50 }
 0x459   : > { %v3617_v39 = vpop.eup %3616  ;;  %2150 = vadd.xlane.f32.xlu0 %v2149_v29 }
 0x45a   : > { %v3619_v12 = vpop.eup %3618 }
 0x45b   : > { %2388 = vmatprep.mubr.f32.mxu0 %v3619_v12  ;;  %v2170_v0 = vadd.f32 %v3619_v12, %v3617_v39 }
 0x45c   : > { %2389 = vmatmul.mubr.f32.gmra.mxu0 %v3617_v39 }
 0x45d   : > { %v3621_v36 = vpop.eup %3620  ;;  %2147 = vadd.xlane.f32.xlu0 %v2146_v42  ;;  %2171 = vadd.xlane.f32.xlu1 %v2170_v0 }
 0x45e   : > { %v3623_v37 = vpop.eup %3622 }
 0x45f   : > { %2393 = vmatprep.mubr.f32.mxu0 %v3623_v37  ;;  %v2173_v25 = vadd.f32 %v3623_v37, %v3621_v36 }
 0x460   : > { %2394 = vmatmul.mubr.f32.gmra.mxu0 %v3621_v36 }
 0x461   : > { %v3625_v23 = vpop.eup %3624  ;;  %2144 = vadd.xlane.f32.xlu0 %v2143_v51  ;;  %2174 = vadd.xlane.f32.xlu1 %v2173_v25 }
 0x462   : > { %v3627_v47 = vpop.eup %3626 }
 0x463   : > { %2398 = vmatprep.mubr.f32.mxu0 %v3627_v47  ;;  %v2176_v7 = vadd.f32 %v3627_v47, %v3625_v23 }
 0x464   : > { %2399 = vmatmul.mubr.f32.gmra.mxu0 %v3625_v23 }
 0x465   : > { %2141 = vadd.xlane.f32.xlu0 %v2140_v4  ;;  %2177 = vadd.xlane.f32.xlu1 %v2176_v7 }
 0x469   : > { %2138 = vadd.xlane.f32.xlu0 %v4762_v24  ;;  %2168 = vadd.xlane.f32.xlu1 %v2167_v52 }
 0x46d   : > { %2135 = vadd.xlane.f32.xlu0 %v4758_v22  ;;  %2120 = vadd.xlane.f32.xlu1 %v4744_v63 }
 0x471   : > { %2132 = vadd.xlane.f32.xlu0 %v4754_v59  ;;  %2165 = vadd.xlane.f32.xlu1 %v2164_v58 }
 0x475   : > { %2117 = vadd.xlane.f32.xlu1 %v4740_v8 }
 0x479   : > { %2162 = vadd.xlane.f32.xlu1 %v2161_v35 }
 0x47d   : > { %2114 = vadd.xlane.f32.xlu1 %v4736_v6 }
 0x481   : > { %2111 = vadd.xlane.f32.xlu1 %v4732_v41 }
 0x485   : > { %2108 = vadd.xlane.f32.xlu1 %v4728_v17 }
 0x489   : > { %2105 = vadd.xlane.f32.xlu1 %v4724_v14 }
 0x48d   : > { %2102 = vadd.xlane.f32.xlu1 %v4720_v32 }
 0x491   : > { %2099 = vadd.xlane.f32.xlu1 %v4716_v1 }
 0x495   : > { %2096 = vadd.xlane.f32.xlu1 %v4712_v53 }
 0x499   : > { %2093 = vadd.xlane.f32.xlu1 %v4708_v13 }
 0x49d   : > { %2090 = vadd.xlane.f32.xlu1 %v4704_v20 }
 0x4a1   : > { %2087 = vadd.xlane.f32.xlu1 %v4700_v40 }
 0x4a5   : > { %2084 = vadd.xlane.f32.xlu1 %v4696_v26 }
 0x4a6   : > { %v2124_v28 = vpop.xlane.xlu1 %2123 }
 0x4a8   : > { %v4834_v6 = vpop.f32.mrf.mxu0 }
 0x4aa   : > { %v2247_v41 = vpop.f32.mrf.mxu0  ;;  %v2127_v57 = vpop.xlane.xlu1 %2126 }
 0x4ac   : > { %v4836_v17 = vpop.f32.mrf.mxu0 }
 0x4ae   : > { %v2252_v14 = vpop.f32.mrf.mxu0  ;;  %v2130_v16 = vpop.xlane.xlu1 %2129 }
 0x4b0   : > { %v4838_v8 = vpop.f32.mrf.mxu0 }
 0x4b2   : > { %v2257_v32 = vpop.f32.mrf.mxu0 }
 0x4b4   : > { %v4840_v1 = vpop.f32.mrf.mxu0 }
 0x4b6   : > { %v2262_v53 = vpop.f32.mrf.mxu0 }
 0x4b8   : > { %v4842_v63 = vpop.f32.mrf.mxu0 }
 0x4ba   : > { %v2267_v13 = vpop.f32.mrf.mxu0 }
 0x4bc   : > { %v4844_v20 = vpop.f32.mrf.mxu0 }
 0x4be   : > { %v2272_v40 = vpop.f32.mrf.mxu0 }
 0x4c0   : > { %v4846_v59 = vpop.f32.mrf.mxu0 }
 0x4c2   : > { %v2277_v26 = vpop.f32.mrf.mxu0 }
 0x4c4   : > { %v4848_v22 = vpop.f32.mrf.mxu0 }
 0x4c6   : > { %v2282_v24 = vpop.f32.mrf.mxu0 }
 0x4c8   : > { %v4850_v49 = vpop.f32.mrf.mxu0 }
 0x4ca   : > { %v2287_v62 = vpop.f32.mrf.mxu0 }
 0x4cc   : > { %v4852_v54 = vpop.f32.mrf.mxu0 }
 0x4ce   : > { %v2292_v55 = vpop.f32.mrf.mxu0 }
 0x4d0   : > { %v4854_v60 = vpop.f32.mrf.mxu0 }
 0x4d2   : > { %v2297_v45 = vpop.f32.mrf.mxu0 }
 0x4d4   : > { %v4856_v27 = vpop.f32.mrf.mxu0 }
 0x4d6   : > { %v2302_v2 = vpop.f32.mrf.mxu0  ;;  %v2160_v13 = vpop.xlane.xlu0 %2159 }
 0x4d8   : > { %v4858_v3 = vpop.f32.mrf.mxu0 }
 0x4da   : > { %v2307_v38 = vpop.f32.mrf.mxu0  ;;  %v2157_v55 = vpop.xlane.xlu0 %2156 }
 0x4dc   : > { %v4860_v56 = vpop.f32.mrf.mxu0 }
 0x4de   : > { %v2312_v15 = vpop.f32.mrf.mxu0 }
 0x4e0   : > { %v4862_v30 = vpop.f32.mrf.mxu0 }
 0x4e2   : > { %v2317_v31 = vpop.f32.mrf.mxu0 }
 0x4e3   : > { %v2154_v31 = vpop.xlane.xlu0 %2153 }
 0x4e4   : > { %v4864_v43 = vpop.f32.mrf.mxu0 }
 0x4e6   : > { %v2322_v44 = vpop.f32.mrf.mxu0  ;;  %v2172_v33 = vpop.xlane.xlu1 %2171 }
 0x4e8   : > { %v4870_v34 = vpop.f32.mrf.mxu0 }
 0x4ea   : > { %v2327_v18 = vpop.f32.mrf.mxu0  ;;  %v2175_v19 = vpop.xlane.xlu1 %2174 }
 0x4ec   : > { %v4872_v61 = vpop.f32.mrf.mxu0 }
 0x4ee   : > { %v2332_v9 = vpop.f32.mrf.mxu0  ;;  %v2178_v10 = vpop.xlane.xlu1 %2177 }
 0x4ef   : > { %3628 = vrcp.f32 %v2178_v10 }
 0x4f0   : > { %v4874_v48 = vpop.f32.mrf.mxu0  ;;  %3630 = vrcp.f32 %v2130_v16 }
 0x4f1   : > { %3632 = vrcp.f32 %v2175_v19 }
 0x4f2   : > { %v2337_v21 = vpop.f32.mrf.mxu0  ;;  %v2169_v50 = vpop.xlane.xlu1 %2168  ;;  %3634 = vrcp.f32 %v2127_v57 }
 0x4f3   : > { %3636 = vrcp.f32 %v2172_v33 }
 0x4f4   : > { %v4876_v46 = vpop.f32.mrf.mxu0  ;;  %3638 = vrcp.f32 %v2124_v28  ;;  %v2151_v28 = vpop.xlane.xlu0 %2150 }
 0x4f5   : > { %3640 = vrcp.f32 %v2169_v50 }
 0x4f6   : > { %v2342_v11 = vpop.f32.mrf.mxu0  ;;  %v2121_v12 = vpop.xlane.xlu1 %2120 }
 0x4f7   : > { %3642 = vrcp.f32 %v2121_v12 }
 0x4f8   : > { %v4878_v29 = vpop.f32.mrf.mxu0 }
 0x4fa   : > { %v2347_v39 = vpop.f32.mrf.mxu0  ;;  %v2166_v37 = vpop.xlane.xlu1 %2165 }
 0x4fb   : > { %3644 = vrcp.f32 %v2166_v37 }
 0x4fc   : > { %v4880_v42 = vpop.f32.mrf.mxu0  ;;  %v3629_v18 = vpop.eup %3628 }
 0x4fd   : > { %v3631_v10 = vpop.eup %3630 }
 0x4fe   : > { %v2352_v0 = vpop.f32.mrf.mxu0  ;;  %v2118_v47 = vpop.xlane.xlu1 %2117  ;;  %v2483_v57 = vmul.f32 %v3631_v10, %v4864_v43 }
 0x4ff   : > { %v3633_v21 = vpop.eup %3632  ;;  %3646 = vrcp.f32 %v2118_v47  ;;  %v2148_v47 = vpop.xlane.xlu0 %2147 }
 0x500   : > { %v4882_v36 = vpop.f32.mrf.mxu0  ;;  %v3635_v50 = vpop.eup %3634 }
 0x501   : > { %v3637_v39 = vpop.eup %3636  ;;  %v2482_v12 = vmul.f32 %v3635_v50, %v4862_v30 }
 0x502   : > { %v2357_v51 = vpop.f32.mrf.mxu0  ;;  %v2163_v58 = vpop.xlane.xlu1 %2162 }
 0x503   : > { %3648 = vrcp.f32 %v2163_v58  ;;  %v3639_v43 = vpop.eup %3638 }
 0x504   : > { %v4884_v25 = vpop.f32.mrf.mxu0  ;;  %v3641_v51 = vpop.eup %3640 }
 0x506   : > { %v2362_v23 = vpop.f32.mrf.mxu0  ;;  %v2115_v32 = vpop.xlane.xlu1 %2114 }
 0x507   : > { %3650 = vrcp.f32 %v2115_v32  ;;  %v2481_v23 = vmul.f32 %v3639_v43, %v4860_v56 }
 0x508   : > { %v4886_v4 = vpop.f32.mrf.mxu0  ;;  %3652 = vrcp.f32 %v2160_v13 }
 0x50a   : > { %v2367_v7 = vpop.f32.mrf.mxu0  ;;  %v2112_v24 = vpop.xlane.xlu1 %2111 }
 0x50b   : > { %3654 = vrcp.f32 %v2112_v24  ;;  %v3643_v7 = vpop.eup %3642 }
 0x50c   : > { %v4888_v52 = vpop.f32.mrf.mxu0  ;;  %3656 = vrcp.f32 %v2157_v55 }
 0x50e   : > { %v2372_v35 = vpop.f32.mrf.mxu0  ;;  %v2109_v38 = vpop.xlane.xlu1 %2108 }
 0x50f   : > { %v3645_v35 = vpop.eup %3644  ;;  %3658 = vrcp.f32 %v2109_v38 }
 0x510   : > { %v4890_v41 = vpop.f32.mrf.mxu0  ;;  %v3647_v32 = vpop.eup %3646  ;;  %3660 = vrcp.f32 %v2154_v31 }
 0x511   : > { %v2479_v56 = vmul.f32 %v3647_v32, %v4856_v27 }
 0x512   : > { %v2377_v14 = vpop.f32.mrf.mxu0  ;;  %v2106_v16 = vpop.xlane.xlu1 %2105 }
 0x513   : > { %v2480_v14 = vmul.f32 %v3643_v7, %v4858_v3  ;;  %3662 = vrcp.f32 %v2106_v16 }
 0x514   : > { %v2380_v53 = vpop.f32.mrf.mxu0  ;;  %3664 = vrcp.f32 %v2151_v28 }
 0x515   : > { %v2495_v13 = vmul.f32 %v3645_v35, %v2380_v53 }
 0x516   : > { %v2382_v40 = vpop.f32.mrf.mxu0  ;;  %v2103_v0 = vpop.xlane.xlu1 %2102 }
 0x517   : > { %v3649_v40 = vpop.eup %3648  ;;  %3666 = vrcp.f32 %v2103_v0 }
 0x518   : > { %v2385_v26 = vpop.f32.mrf.mxu0  ;;  %v2494_v24 = vmul.f32 %v3649_v40, %v4890_v41  ;;  %3668 = vrcp.f32 %v2148_v47 }
 0x519   : > { %v2496_v58 = vmul.f32 %v3641_v51, %v2385_v26  ;;  %v3651_v26 = vpop.eup %3650 }
 0x51a   : > { %v2387_v62 = vpop.f32.mrf.mxu0  ;;  %v2100_v30 = vpop.xlane.xlu1 %2099 }
 0x51b   : > { %v2145_v62 = vpop.xlane.xlu0 %2144  ;;  %v3653_v3 = vpop.eup %3652  ;;  %3670 = vrcp.f32 %v2100_v30 }
 0x51c   : > { %v2390_v45 = vpop.f32.mrf.mxu0  ;;  %v2493_v38 = vmul.f32 %v3653_v3, %v4888_v52  ;;  %3672 = vrcp.f32 %v2145_v62 }
 0x51d   : > { %v2497_v37 = vmul.f32 %v3637_v39, %v2390_v45  ;;  %v2478_v45 = vmul.f32 %v3651_v26, %v4854_v60 }
 0x51e   : > { %v2392_v2 = vpop.f32.mrf.mxu0  ;;  %v2097_v55 = vpop.xlane.xlu1 %2096 }
 0x51f   : > { %v2142_v53 = vpop.xlane.xlu0 %2141  ;;  %v3655_v2 = vpop.eup %3654  ;;  %3674 = vrcp.f32 %v2097_v55 }
 0x520   : > { %v2395_v15 = vpop.f32.mrf.mxu0  ;;  %v3657_v41 = vpop.eup %3656  ;;  %3676 = vrcp.f32 %v2142_v53 }
 0x521   : > { %v2498_v33 = vmul.f32 %v3633_v21, %v2395_v15  ;;  %v2477_v15 = vmul.f32 %v3655_v2, %v4852_v54  ;;  %v3659_v31 = vpop.eup %3658 }
 0x522   : > { %v2397_v44 = vpop.f32.mrf.mxu0  ;;  %v2094_v27 = vpop.xlane.xlu1 %2093  ;;  %v2476_v52 = vmul.f32 %v3659_v31, %v4850_v49 }
 0x523   : > { %v2492_v44 = vmul.f32 %v3657_v41, %v4886_v4  ;;  %v3661_v60 = vpop.eup %3660  ;;  %3678 = vrcp.f32 %v2094_v27 }
 0x524   : > { %v2400_v9 = vpop.f32.mrf.mxu0  ;;  %v2491_v10 = vmul.f32 %v3661_v60, %v4884_v25 }
 0x525   : > { %v2499_v19 = vmul.f32 %v3629_v18, %v2400_v9  ;;  %v2139_v18 = vpop.xlane.xlu0 %2138  ;;  %v3663_v9 = vpop.eup %3662 }
 0x526   : > { %v2402_v11 = vpop.f32.mrf.mxu0  ;;  %v2091_v16 = vpop.xlane.xlu1 %2090  ;;  %3680 = vrcp.f32 %v2139_v18 }
 0x527   : > { %3219 = vmatprep.subr.msk.mxu1 %vm367_vm1, %v2499_v19  ;;  %v3665_v54 = vpop.eup %3664  ;;  %v2475_v19 = vmul.f32 %v3663_v9, %v4848_v22  ;;  %3682 = vrcp.f32 %v2091_v16 }
 0x528   : > { %3220 = vmatpush3.xpose.msk.msra.mxu1 %vm367_vm1, %v2483_v57  ;;  %v3667_v21 = vpop.eup %3666  ;;  %v2490_v57 = vmul.f32 %v3665_v54, %v4882_v36 }
 0x529   : > { %3221 = vmatprep.subr.msk.mxu1 %vm367_vm1, %v2498_v33  ;;  %v2136_v4 = vpop.xlane.xlu0 %2135  ;;  %v3669_v25 = vpop.eup %3668  ;;  %v2474_v11 = vmul.f32 %v3667_v21, %v4846_v59 }
 0x52a   : > { %v2088_v49 = vpop.xlane.xlu1 %2087  ;;  %v3671_v33 = vpop.eup %3670  ;;  %3684 = vrcp.f32 %v2136_v4  ;;  %v2489_v28 = vmul.f32 %v3669_v25, %v4880_v42 }
 0x52b   : > { %v3673_v50 = vpop.eup %3672  ;;  %3686 = vrcp.f32 %v2088_v49  ;;  %v2473_v22 = vmul.f32 %v3671_v33, %v4844_v20 }
 0x52c   : > { %3222 = vmatpush3.xpose.msk.msra.mxu1 %vm367_vm1, %v2482_v12  ;;  %v3675_v36 = vpop.eup %3674  ;;  %v2488_v12 = vmul.f32 %v3673_v50, %v4878_v29 }
 0x52d   : > { %3223 = vmatprep.subr.msk.mxu1 %vm367_vm1, %v2497_v37  ;;  %v2133_v39 = vpop.xlane.xlu0 %2132  ;;  %v3677_v37 = vpop.eup %3676  ;;  %v2472_v59 = vmul.f32 %v3675_v36, %v4842_v63 }
 0x52e   : > { %3688 = vrcp.f32 %v2133_v39  ;;  %v2085_v0 = vpop.xlane.xlu1 %2084  ;;  %v2487_v43 = vmul.f32 %v3677_v37, %v4876_v46 }
 0x52f   : > { %3690 = vrcp.f32 %v2085_v0 }
 0x530   : > { %3224 = vmatpush3.xpose.msk.msra.mxu1 %vm367_vm1, %v2481_v23  ;;  %v3679_v42 = vpop.eup %3678 }
 0x531   : > { %3225 = vmatprep.subr.msk.mxu1 %vm367_vm1, %v2496_v58  ;;  %v2471_v20 = vmul.f32 %v3679_v42, %v4840_v1 }
 0x533   : > { %v3681_v51 = vpop.eup %3680 }
 0x534   : > { %3226 = vmatpush3.xpose.msk.msra.mxu1 %vm367_vm1, %v2480_v14  ;;  %v3683_v29 = vpop.eup %3682  ;;  %v2486_v23 = vmul.f32 %v3681_v51, %v4874_v48 }
 0x535   : > { %3227 = vmatprep.subr.msk.mxu1 %vm367_vm1, %v2495_v13  ;;  %v2470_v63 = vmul.f32 %v3683_v29, %v4838_v8 }
 0x537   : > { %v3685_v47 = vpop.eup %3684 }
 0x538   : > { %3228 = vmatpush3.xpose.msk.msra.mxu1 %vm367_vm1, %v2479_v56  ;;  %v3687_v46 = vpop.eup %3686  ;;  %v2485_v7 = vmul.f32 %v3685_v47, %v4872_v61 }
 0x539   : > { %3229 = vmatprep.subr.msk.mxu1 %vm367_vm1, %v2494_v24  ;;  %v2469_v1 = vmul.f32 %v3687_v46, %v4836_v17 }
 0x53b   : > { %v3689_v58 = vpop.eup %3688 }
 0x53c   : > { %3230 = vmatpush3.xpose.msk.msra.mxu1 %vm367_vm1, %v2478_v45  ;;  %v3691_v48 = vpop.eup %3690  ;;  %v2484_v30 = vmul.f32 %v3689_v58, %v4870_v34 }
 0x53d   : > { %3231 = vmatprep.subr.msk.mxu1 %vm367_vm1, %v2493_v38  ;;  %v2468_v8 = vmul.f32 %v3691_v48, %v4834_v6 }
 0x540   : > { %3232 = vmatpush3.xpose.msk.msra.mxu1 %vm367_vm1, %v2477_v15 }
 0x541   : > { %3233 = vmatprep.subr.msk.mxu1 %vm367_vm1, %v2492_v44 }
 0x544   : > { %3234 = vmatpush3.xpose.msk.msra.mxu1 %vm367_vm1, %v2476_v52 }
 0x545   : > { %3235 = vmatprep.subr.msk.mxu1 %vm367_vm1, %v2491_v10 }
 0x548   : > { %3236 = vmatpush3.xpose.msk.msra.mxu1 %vm367_vm1, %v2475_v19 }
 0x549   : > { %3237 = vmatprep.subr.msk.mxu1 %vm367_vm1, %v2490_v57 }
 0x54c   : > { %3238 = vmatpush3.xpose.msk.msra.mxu1 %vm367_vm1, %v2474_v11 }
 0x54d   : > { %3239 = vmatprep.subr.msk.mxu1 %vm367_vm1, %v2489_v28 }
 0x550   : > { %3240 = vmatpush3.xpose.msk.msra.mxu1 %vm367_vm1, %v2473_v22 }
 0x551   : > { %3241 = vmatprep.subr.msk.mxu1 %vm367_vm1, %v2488_v12 }
 0x554   : > { %3242 = vmatpush3.xpose.msk.msra.mxu1 %vm367_vm1, %v2472_v59 }
 0x555   : > { %3243 = vmatprep.subr.msk.mxu1 %vm367_vm1, %v2487_v43 }
 0x558   : > { %3244 = vmatpush3.xpose.msk.msra.mxu1 %vm367_vm1, %v2471_v20 }
 0x559   : > { %3245 = vmatprep.subr.msk.mxu1 %vm367_vm1, %v2486_v23 }
 0x55c   : > { %3246 = vmatpush3.xpose.msk.msra.mxu1 %vm367_vm1, %v2470_v63 }
 0x55d   : > { %3247 = vmatprep.subr.msk.mxu1 %vm367_vm1, %v2485_v7 }
 0x560   : > { %3248 = vmatpush3.xpose.msk.msra.mxu1 %vm367_vm1, %v2469_v1 }
 0x561   : > { %3249 = vmatprep.subr.msk.mxu1 %vm367_vm1, %v2484_v30 }
 0x564   : > { %3250 = vmatpush3.xpose.msk.msra.mxu1 %vm367_vm1, %v2468_v8 }
 0x567   : > { %3252 = vmatmul.mubr.msk.f32.vlgmr.msra.gmra.mxu1 %vm367_vm1, %v4866_v5 }
 0x627   : > { %v2666_v61 = vpop.f32.mrf.mxu1 }
 0x629   : > { %v2668_v17 = vpop.f32.mrf.mxu1 }
 0x62a   : > { %v2673_v35 = vcombine.low %v2666_v61, %v2668_v17 }
 0x62c   : > { %2675 = vst [vmem:[%s292_s17] sm:$0xff] %v2673_v35 }
 0x62d   : > { %3811 = shalt.err (!%p3808_p8)
}
 0x62e   : > { %s3812_s12 = scalar_lea.hbm %s2691_s6, 128  ;;  %s3816_s1 = scalar_lea.hbm %s5000_s5, 256 }
 0x62f   : > { %p3813_p12 = scmp.ne.s32.totalorder %s2691_s6, %s3812_s12  ;;  %p3817_p10 = scmp.lt.s32.totalorder %s2691_s6, %s5000_s5 }
 0x630   : > { %p3818_p0 = scmp.lt.s32.totalorder %s3816_s1, %s3812_s12 }
 0x631   : > { %p3814_p5 = pnand %p3813_p12, %p4031_p13 }
 0x632   : > { %p3819_p9 = por %p3818_p0, %p3817_p10 }
 0x633   : > { %p3815_p7 = pneg %p3814_p5 }
 0x635   : > { %p3820_p1 = pnand %p3819_p9, %p3815_p7 }
 0x637   : > { %3823 = shalt.err (!%p3820_p1)
}
 0x638   : > { %3419 = dma.vmem_to_hbm [thread:$0]  (%p4031_p13), %s2694_s27, 128, %s2691_s6, %s2677_s7  }
 0x639 PF: > { %s2705_s30 = sand.u32 1, %s3866_s18   ;;  %p5058_p11 = scmp.ne.s32.totalorder %s5022_s29, 0 }
 0x63a   : > { %p5059_p6 = scmp.ge.s32.totalorder %s3886_s23, 2  ;;  %s2706_s17 = scalar_lea.sflag [#allocation7], %s2705_s30 }
 0x63c   : > { %p3436_p3 = pnand %p5059_p6, %p5058_p11 }
 0x63e   : > { %p3437_p4 = pneg %p3436_p3 }
 0x640   : > { %3861 = dma.done.wait (%p3437_p4), %s2706_s17, 128  }
 0x641   : > { %3863 = vsyncadd (%p3437_p4), %s2706_s17, 4294967168  ;;  %s23_s23 = sadd.s32 1, %s3886_s23   ;;  %s5060_s18 = smov %s3870_s19 }
 0x642   : > { %p20_p2 = scmp.ge.s32.totalorder %s23_s23, 4   ;;  %s5061_s19 = smov %s3874_s20 }
 0x643   : > { %s5062_s20 = smov %s4043_s15  ;;  %s5063_s21 = smov %s3882_s22 }
 0x644   : > { %s5064_s22 = smov %s5066_s9  ;;  %22 = sbr.rel (!%p20_p2) target bundleno = 10 (0xa), region = 102 }
 0x649   :  { %2711 = vsyncpa [#allocation6], 1 }
 0x64a   :  { %2713 = vsyncpa [#allocation6 + $0x1], 1 }
 0x64b   :  { %2714 = vsyncpa [#allocation9], 1 }
 0x64c   :  { %2715 = vsyncpa [#allocation12], 1 }
 0x64d   :  { %2716 = vsyncpa [#allocation7], 1 }
 0x64e   :  { %2718 = vsyncpa [#allocation7 + $0x1], 1 }

</bundles_post_ra>
